<compile_context>
chip_gen: v7x
topology: tpu7x:2x2x1
jax: 0.10.0
libtpu: 0.0.40
codegen_flags: <defaults>
</compile_context>

<pallas_src>
import functools
import math

import jax
import jax.numpy as jnp
from jax import lax
from jax.experimental import pallas as pl
from jax.experimental.pallas import tpu as pltpu

LN_EPS = 1e-5                    # PyTorch nn.LayerNorm default
MATMUL_DTYPE = jnp.bfloat16      # MXU operand dtype; accumulation stays f32
ACT_DTYPE = jnp.bfloat16         # inter-sublayer activations at rest


# ------------------------------------------------------------ in-kernel helpers ---

def _mm(a, b):
    """MXU matmul: bf16 operands, f32 accumulation (casts are no-ops if already bf16)."""
    return jnp.dot(a.astype(MATMUL_DTYPE), b.astype(MATMUL_DTYPE),
                   preferred_element_type=jnp.float32)


def _ln(y, g, b, eps):
    """LayerNorm over the last dim (f32 statistics)."""
    mu = jnp.mean(y, axis=-1, keepdims=True)
    var = jnp.mean((y - mu) ** 2, axis=-1, keepdims=True)
    return (y - mu) * lax.rsqrt(var + eps) * g + b


# -------------------------------------------------------------------- kernels ---

def _patch_embed_kernel(p_ref, w_ref, b_ref, g_ref, be_ref, pos_ref, o_ref, *, eps):
    """patch_proj + patch_norm + pos_embedding for one batch tile (Bt elements)."""
    bt, n, pd = p_ref.shape
    d = w_ref.shape[1]
    x = p_ref[...].reshape(bt * n, pd)                   # fold batch into M
    y = _mm(x, w_ref[...]) + b_ref[...]                  # (bt*n, d) f32
    y = _ln(y, g_ref[...], be_ref[...], eps)
    y = y.reshape(bt, n, d) + pos_ref[...][None]
    # nn.Dropout(0.1): identity in eval mode.
    o_ref[...] = y.astype(o_ref.dtype)


def _attn_block_kernel(xq_ref, xkv_ref, wq_ref, bq_ref, wk_ref, bk_ref,
                       wv_ref, bv_ref, wo_ref, bo_ref, g_ref, b_ref,
                       o_ref, attn_ref, *, num_heads, eps):
    """One full (self- or cross-) attention sub-layer for one batch tile:
    Q/K/V proj (batch folded into M), multi-head SDPA (batched over the tile),
    out-proj, residual add, LayerNorm."""
    bt, m, d = xq_ref.shape
    lk = xkv_ref.shape[1]
    dh = d // num_heads
    scale = 1.0 / math.sqrt(dh)

    xq = xq_ref[...].reshape(bt * m, d)                  # bf16, residual source
    xkv = xkv_ref[...].reshape(bt * lk, d)

    # Projections as single large-M matmuls.
    q = _mm(xq, wq_ref[...]) + bq_ref[...]               # (bt*m, d)  f32
    k = _mm(xkv, wk_ref[...]) + bk_ref[...]              # (bt*lk, d) f32
    v = _mm(xkv, wv_ref[...]) + bv_ref[...]              # (bt*lk, d) f32

    # Per-head SDPA, batched over the bt batch elements via batch-dim einsum
    # (no materialized transpose).  Head outputs go straight into a VMEM slab.
    for h in range(num_heads):                           # static loop
        sl = slice(h * dh, (h + 1) * dh)
        qh = q[:, sl].reshape(bt, m, dh).astype(MATMUL_DTYPE)
        kh = k[:, sl].reshape(bt, lk, dh).astype(MATMUL_DTYPE)
        vh = v[:, sl].reshape(bt, lk, dh).astype(MATMUL_DTYPE)
        s = jnp.einsum("bqd,bkd->bqk", qh, kh,
                       preferred_element_type=jnp.float32) * scale
        s = s - jnp.max(s, axis=-1, keepdims=True)
        p = jnp.exp(s)
        p = p * pl.reciprocal(jnp.sum(p, axis=-1, keepdims=True), approx=True)
        oh = jnp.einsum("bqk,bkd->bqd", p.astype(MATMUL_DTYPE), vh,
                        preferred_element_type=jnp.float32)
        attn_ref[:, sl] = oh.reshape(bt * m, dh).astype(attn_ref.dtype)

    y = _mm(attn_ref[...], wo_ref[...]) + bo_ref[...] + xq.astype(jnp.float32)
    o_ref[...] = _ln(y, g_ref[...], b_ref[...], eps).reshape(bt, m, d).astype(o_ref.dtype)


def _ffn_block_kernel(x_ref, w1_ref, b1_ref, w2_ref, b2_ref, g_ref, b_ref, o_ref, *, eps):
    """FFN sub-layer for one row tile: w1 + ReLU + w2 + residual + LayerNorm.
    The (tm, ffn_dim) hidden stays on-chip."""
    x = x_ref[...]                                       # (tm, d) bf16
    h = jnp.maximum(_mm(x, w1_ref[...]) + b1_ref[...], 0.0)
    y = _mm(h, w2_ref[...]) + b2_ref[...] + x.astype(jnp.float32)
    o_ref[...] = _ln(y, g_ref[...], b_ref[...], eps).astype(o_ref.dtype)


def _layernorm_kernel(x_ref, g_ref, b_ref, o_ref, *, eps):
    """Plain LayerNorm (no residual, no zeros array)."""
    x = x_ref[...].astype(jnp.float32)
    o_ref[...] = _ln(x, g_ref[...], b_ref[...], eps).astype(o_ref.dtype)


# --------------------------------------------------------------- tiling helpers ---

def _batch_tile(b, rows_per_elem, target_rows=256):
    """Batch-tile size: prefer >= 2 grid steps (v7x dual TC), then the largest
    tile whose folded row count stays near an MXU-friendly target."""
    divs = [t for t in range(1, b + 1) if b % t == 0]
    cands = [t for t in divs if b // t >= 2] or divs
    fitting = [t for t in cands if t * rows_per_elem <= target_rows]
    return max(fitting) if fitting else min(cands)


def _row_tile(rows, max_tile=512):
    """Row-tile (multiple of 8, divides rows); prefer >= 2 grid steps."""
    divs = [t for t in range(8, rows + 1, 8) if rows % t == 0] or [rows]
    cands = [t for t in divs if rows // t >= 2] or divs
    fitting = [t for t in cands if t <= max_tile]
    return max(fitting) if fitting else min(cands)


def _nbytes(*arrays):
    return int(sum(a.size * a.dtype.itemsize for a in arrays))


def _const_spec(shape):
    """Constant-index (grid-invariant) parameter block: single-buffered to
    avoid wasting VMEM on a second copy that is never used."""
    zeros = (0,) * len(shape)
    return pl.BlockSpec(shape, lambda i, _z=zeros: _z, pipeline_mode=pl.Buffered(1))


def _compiler_params(working_set_bytes):
    """Parallel 1-D grid + an explicit scoped-VMEM limit sized to the working
    set (v5e default is only 16 MiB); capped below v7x physical VMEM."""
    limit = int(min(max(3 * int(working_set_bytes) + (8 << 20), 32 << 20), 64 << 20))
    return pltpu.CompilerParams(dimension_semantics=("parallel",),
                                vmem_limit_bytes=limit)


# ------------------------------------------------------------------- wrappers ---

def patch_embed(patches, params):
    b, n, pd = patches.shape
    d = params["patch_proj_w"].shape[1]
    bt = _batch_tile(b, n)
    bmap = lambda i: (i, 0, 0)

    w_bytes = _nbytes(params["patch_proj_w"], params["patch_proj_b"],
                      params["patch_norm_g"], params["patch_norm_b"],
                      params["pos_embedding"])
    act_bytes = bt * n * (pd + d) * 2
    ce = pl.CostEstimate(flops=int(2 * b * n * pd * d + 10 * b * n * d),
                         transcendentals=int(b * n),
                         bytes_accessed=int(_nbytes(patches) + w_bytes + b * n * d * 2))

    return pl.pallas_call(
        functools.partial(_patch_embed_kernel, eps=LN_EPS),
        out_shape=jax.ShapeDtypeStruct((b, n, d), ACT_DTYPE),
        grid=(b // bt,),
        in_specs=[pl.BlockSpec((bt, n, pd), bmap),
                  _const_spec((pd, d)),
                  _const_spec((1, d)),
                  _const_spec((1, d)),
                  _const_spec((1, d)),
                  _const_spec((n, d))],
        out_specs=pl.BlockSpec((bt, n, d), bmap),
        compiler_params=_compiler_params(w_bytes + 4 * act_bytes),
        cost_estimate=ce,
    )(patches, params["patch_proj_w"], params["patch_proj_b"],
      params["patch_norm_g"], params["patch_norm_b"], params["pos_embedding"])


def attention_sublayer(x_q, x_kv, p, num_heads):
    """Fused attention sub-layer (proj + MHA + out-proj + residual + LN),
    grid over batch tiles."""
    b, m, d = x_q.shape
    lk = x_kv.shape[1]
    bt = _batch_tile(b, max(m, lk))
    bmap = lambda i: (i, 0, 0)

    w_bytes = _nbytes(p["wq"], p["wk"], p["wv"], p["wo"],
                      p["bq"], p["bk"], p["bv"], p["bo"], p["ln_g"], p["ln_b"])
    act_bytes = bt * (2 * m + lk) * d * 2 + bt * (m + 2 * lk) * d * 4
    ce = pl.CostEstimate(
        flops=int(2 * b * (2 * m * d * d + 2 * lk * d * d + 2 * m * lk * d)),
        transcendentals=int(b * num_heads * m * lk),
        bytes_accessed=int(_nbytes(x_q, x_kv) + w_bytes + b * m * d * 2))

    return pl.pallas_call(
        functools.partial(_attn_block_kernel, num_heads=num_heads, eps=LN_EPS),
        out_shape=jax.ShapeDtypeStruct((b, m, d), x_q.dtype),
        grid=(b // bt,),
        in_specs=[pl.BlockSpec((bt, m, d), bmap),        # queries / residual source
                  pl.BlockSpec((bt, lk, d), bmap),       # key/value source
                  _const_spec((d, d)), _const_spec((1, d)),    # wq, bq
                  _const_spec((d, d)), _const_spec((1, d)),    # wk, bk
                  _const_spec((d, d)), _const_spec((1, d)),    # wv, bv
                  _const_spec((d, d)), _const_spec((1, d)),    # wo, bo
                  _const_spec((1, d)), _const_spec((1, d))],   # ln gamma, beta
        out_specs=pl.BlockSpec((bt, m, d), bmap),
        scratch_shapes=[pltpu.VMEM((bt * m, d), MATMUL_DTYPE)],
        compiler_params=_compiler_params(w_bytes + 4 * act_bytes),
        cost_estimate=ce,
    )(x_q, x_kv, p["wq"], p["bq"], p["wk"], p["bk"], p["wv"], p["bv"],
      p["wo"], p["bo"], p["ln_g"], p["ln_b"])


def ffn_sublayer(x, p):
    """Fused FFN sub-layer (w1+ReLU+w2+residual+LN), grid over row tiles."""
    b, m, d = x.shape
    rows = b * m
    ffn = p["w1"].shape[1]
    tm = _row_tile(rows)
    xf = x.reshape(rows, d)
    xmap = lambda i: (i, 0)

    w_bytes = _nbytes(p["w1"], p["b1"], p["w2"], p["b2"], p["ln_g"], p["ln_b"])
    act_bytes = 2 * tm * d * 2 + tm * ffn * 4
    ce = pl.CostEstimate(flops=int(4 * rows * d * ffn),
                         transcendentals=int(rows),
                         bytes_accessed=int(2 * _nbytes(x) + w_bytes))

    out = pl.pallas_call(
        functools.partial(_ffn_block_kernel, eps=LN_EPS),
        out_shape=jax.ShapeDtypeStruct((rows, d), x.dtype),
        grid=(rows // tm,),
        in_specs=[pl.BlockSpec((tm, d), xmap),
                  _const_spec((d, ffn)), _const_spec((1, ffn)),
                  _const_spec((ffn, d)), _const_spec((1, d)),
                  _const_spec((1, d)), _const_spec((1, d))],
        out_specs=pl.BlockSpec((tm, d), xmap),
        compiler_params=_compiler_params(w_bytes + 4 * act_bytes),
        cost_estimate=ce,
    )(xf, p["w1"], p["b1"], p["w2"], p["b2"], p["ln_g"], p["ln_b"])
    return out.reshape(b, m, d)


def final_layernorm(x, gamma, beta):
    b, m, d = x.shape
    rows = b * m
    tm = _row_tile(rows)
    xf = x.reshape(rows, d)
    xmap = lambda i: (i, 0)
    ce = pl.CostEstimate(flops=int(10 * rows * d), transcendentals=int(rows),
                         bytes_accessed=int(_nbytes(x) + rows * d * 4))
    out = pl.pallas_call(
        functools.partial(_layernorm_kernel, eps=LN_EPS),
        out_shape=jax.ShapeDtypeStruct((rows, d), jnp.float32),
        grid=(rows // tm,),
        in_specs=[pl.BlockSpec((tm, d), xmap),
                  _const_spec((1, d)), _const_spec((1, d))],
        out_specs=pl.BlockSpec((tm, d), xmap),
        compiler_params=_compiler_params(_nbytes(gamma, beta) + 8 * tm * d * 4),
        cost_estimate=ce,
    )(xf, gamma, beta)
    return out.reshape(b, m, d)


# ----------------------------------------------------------------- model fwd ---

def perceiver_image_encoder_forward(x, params, *, num_heads, patch_size, image_size):
    b, c, hgt, wdt = x.shape
    # Resize((image_size, image_size)): input is already at image_size -> identity.
    # TODO(synk): bilinear (torchvision) resize for mismatched input sizes.
    assert (hgt, wdt) == (image_size, image_size)

    # Rearrange 'b c (h p1) (w p2) -> b (h w) (c p1 p2)' (pure-JAX glue, done once),
    # then cast the activation to bf16 before it ever hits a pallas_call boundary.
    p = patch_size
    nh, nw = hgt // p, wdt // p
    patches = (x.reshape(b, c, nh, p, nw, p)
                .transpose(0, 2, 4, 1, 3, 5)
                .reshape(b, nh * nw, c * p * p)).astype(ACT_DTYPE)

    # Fused patch projection + LayerNorm + positional embedding (dropout = identity).
    memory = patch_embed(patches, params)                       # (b, n, d) bf16

    tgt = jnp.broadcast_to(params["memory_tokens"][None],
                           (b,) + params["memory_tokens"].shape)  # bf16

    # nn.TransformerDecoderLayer defaults: post-norm, ReLU, dropout=identity (eval).
    for layer_p in params["layers"]:
        tgt = attention_sublayer(tgt, tgt, layer_p["self_attn"], num_heads)
        tgt = attention_sublayer(tgt, memory, layer_p["cross_attn"], num_heads)
        tgt = ffn_sublayer(tgt, layer_p)

    return final_layernorm(tgt, params["final_ln_g"], params["final_ln_b"])


# -------------------------------------------------------------- param init ---

def init_params(key, *, dim, num_layers, patch_size, num_channels, image_size,
                memory_tokens, ffn_dim=2048):
    num_patches = (image_size // patch_size) ** 2
    patch_dim = num_channels * patch_size * patch_size

    def nxt():
        nonlocal key
        key, sub = jax.random.split(key)
        return sub

    def linear(k_in, k_out):
        scale = 1.0 / (k_in ** 0.5)
        w = jax.random.uniform(nxt(), (k_in, k_out), jnp.float32, -scale, scale)
        bias = jax.random.uniform(nxt(), (1, k_out), jnp.float32, -scale, scale)
        return w, bias

    def ln_params():
        return jnp.ones((1, dim), jnp.float32), jnp.zeros((1, dim), jnp.float32)

    def attn_params():
        wq, bq = linear(dim, dim)
        wk, bk = linear(dim, dim)
        wv, bv = linear(dim, dim)
        wo, bo = linear(dim, dim)
        g, b = ln_params()
        return dict(wq=wq, bq=bq, wk=wk, bk=bk, wv=wv, bv=bv,
                    wo=wo, bo=bo, ln_g=g, ln_b=b)

    layers = []
    for _ in range(num_layers):
        w1, b1 = linear(dim, ffn_dim)     # dim_feedforward defaults to 2048 in PyTorch
        w2, b2 = linear(ffn_dim, dim)
        g3, b3 = ln_params()
        layers.append(dict(self_attn=attn_params(), cross_attn=attn_params(),
                           w1=w1, b1=b1, w2=w2, b2=b2, ln_g=g3, ln_b=b3))

    pw, pb = linear(patch_dim, dim)
    pg, pbeta = ln_params()
    fg, fb = ln_params()
    return dict(
        memory_tokens=jax.random.normal(nxt(), (memory_tokens, dim), jnp.float32),
        patch_proj_w=pw, patch_proj_b=pb,
        patch_norm_g=pg, patch_norm_b=pbeta,
        # TODO(synk): PositionalEncoding class body not provided; modeled as a learned
        # additive (num_patches, dim) embedding.
        pos_embedding=0.02 * jax.random.normal(nxt(), (num_patches, dim), jnp.float32),
        layers=layers,
        final_ln_g=fg, final_ln_b=fb,
    )


_BF16_PARAM_KEYS = frozenset(
    {"patch_proj_w", "wq", "wk", "wv", "wo", "w1", "w2", "memory_tokens"})


def prepare_params(params):
    """Pre-cast matmul weights (and the memory tokens) to bf16 ONCE so weight
    HBM->VMEM DMA and resident VMEM are genuinely halved.  Biases, LayerNorm
    params and the positional embedding stay f32 (they feed f32 epilogues)."""
    def _cast(obj, key=None):
        if isinstance(obj, dict):
            return {k: _cast(v, k) for k, v in obj.items()}
        if isinstance(obj, (list, tuple)):
            return type(obj)(_cast(v, key) for v in obj)
        if key in _BF16_PARAM_KEYS:
            return obj.astype(MATMUL_DTYPE)
        return obj
    return _cast(params)


# --------------------------------------------------------------------- main ---

if __name__ == "__main__":
    DIM, HEADS, LAYERS = 32, 4, 2
    IMAGE, PATCH, CH = 16, 4, 4
    MEM_TOKENS = 16
    B = 2

    root = jax.random.PRNGKey(0)
    pkey, xkey = jax.random.split(root)

    params = prepare_params(init_params(
        pkey, dim=DIM, num_layers=LAYERS, patch_size=PATCH,
        num_channels=CH, image_size=IMAGE, memory_tokens=MEM_TOKENS))

    x = jax.random.normal(xkey, (B, CH, IMAGE, IMAGE), jnp.float32)

    fwd = jax.jit(functools.partial(perceiver_image_encoder_forward,
                                    num_heads=HEADS, patch_size=PATCH,
                                    image_size=IMAGE))
    out = fwd(x, params)
    jax.block_until_ready(out)
    assert out.shape == (B, MEM_TOKENS, DIM)
    assert bool(jnp.all(jnp.isfinite(out)))
    print("KERNEL_OK")
</pallas_src>

<mosaic_0001>
module attributes {stable_mosaic.version = 11 : i64} {
  func.func @_attn_block_kernel(%arg0: i32, %arg1: memref<1x16x32xbf16, #tpu.memory_space<vmem>>, %arg2: memref<1x16x32xbf16, #tpu.memory_space<vmem>>, %arg3: memref<32x32xbf16, #tpu.memory_space<vmem>>, %arg4: memref<1x32xf32, #tpu.memory_space<vmem>>, %arg5: memref<32x32xbf16, #tpu.memory_space<vmem>>, %arg6: memref<1x32xf32, #tpu.memory_space<vmem>>, %arg7: memref<32x32xbf16, #tpu.memory_space<vmem>>, %arg8: memref<1x32xf32, #tpu.memory_space<vmem>>, %arg9: memref<32x32xbf16, #tpu.memory_space<vmem>>, %arg10: memref<1x32xf32, #tpu.memory_space<vmem>>, %arg11: memref<1x32xf32, #tpu.memory_space<vmem>>, %arg12: memref<1x32xf32, #tpu.memory_space<vmem>>, %arg13: memref<1x16x32xbf16, #tpu.memory_space<vmem>>, %arg14: memref<16x32xbf16, #tpu.memory_space<vmem>>) attributes {dimension_semantics = [#tpu.dimension_semantics<parallel>], iteration_bounds = array<i64: 2>, scalar_prefetch = 0 : i64, scratch_operands = 1 : i64, tpu.core_type = #tpu.core_type<tc>, window_params = [{transform_indices = @transform_0, window_bounds = array<i64: 1, 16, 32>}, {transform_indices = @transform_1, window_bounds = array<i64: 1, 16, 32>}, {pipeline_mode = #tpu.pipeline_mode<synchronous>, transform_indices = @transform_2, window_bounds = array<i64: 32, 32>}, {pipeline_mode = #tpu.pipeline_mode<synchronous>, transform_indices = @transform_3, window_bounds = array<i64: 1, 32>}, {pipeline_mode = #tpu.pipeline_mode<synchronous>, transform_indices = @transform_4, window_bounds = array<i64: 32, 32>}, {pipeline_mode = #tpu.pipeline_mode<synchronous>, transform_indices = @transform_5, window_bounds = array<i64: 1, 32>}, {pipeline_mode = #tpu.pipeline_mode<synchronous>, transform_indices = @transform_6, window_bounds = array<i64: 32, 32>}, {pipeline_mode = #tpu.pipeline_mode<synchronous>, transform_indices = @transform_7, window_bounds = array<i64: 1, 32>}, {pipeline_mode = #tpu.pipeline_mode<synchronous>, transform_indices = @transform_8, window_bounds = array<i64: 32, 32>}, {pipeline_mode = #tpu.pipeline_mode<synchronous>, transform_indices = @transform_9, window_bounds = array<i64: 1, 32>}, {pipeline_mode = #tpu.pipeline_mode<synchronous>, transform_indices = @transform_10, window_bounds = array<i64: 1, 32>}, {pipeline_mode = #tpu.pipeline_mode<synchronous>, transform_indices = @transform_11, window_bounds = array<i64: 1, 32>}, {transform_indices = @transform_12, window_bounds = array<i64: 1, 16, 32>}]} {
    %c0 = arith.constant 0 : index
    %c0_0 = arith.constant 0 : index
    %c0_1 = arith.constant 0 : index
    %0 = vector.load %arg1[%c0, %c0_0, %c0_1] : memref<1x16x32xbf16, #tpu.memory_space<vmem>>, vector<1x16x32xbf16>
    %1 = vector.shape_cast %0 : vector<1x16x32xbf16> to vector<16x32xbf16>
    %c0_2 = arith.constant 0 : index
    %c0_3 = arith.constant 0 : index
    %c0_4 = arith.constant 0 : index
    %2 = vector.load %arg2[%c0_2, %c0_3, %c0_4] : memref<1x16x32xbf16, #tpu.memory_space<vmem>>, vector<1x16x32xbf16>
    %3 = vector.shape_cast %2 : vector<1x16x32xbf16> to vector<16x32xbf16>
    %c0_5 = arith.constant 0 : index
    %c0_6 = arith.constant 0 : index
    %4 = vector.load %arg3[%c0_5, %c0_6] : memref<32x32xbf16, #tpu.memory_space<vmem>>, vector<32x32xbf16>
    %cst = arith.constant dense<0.000000e+00> : vector<16x32xf32>
    %5 = tpu.matmul %1, %4, %cst {dimension_numbers = #tpu.dot_dimension_numbers<[1], [0], [0], [1], [0, 0, 1, 1], [], []>} : vector<16x32xbf16>, vector<32x32xbf16>, vector<16x32xf32> -> vector<16x32xf32>
    %c0_7 = arith.constant 0 : index
    %c0_8 = arith.constant 0 : index
    %6 = vector.load %arg4[%c0_7, %c0_8] : memref<1x32xf32, #tpu.memory_space<vmem>>, vector<1x32xf32>
    %7 = vector.broadcast %6 : vector<1x32xf32> to vector<16x32xf32>
    %8 = arith.addf %5, %7 : vector<16x32xf32>
    %c0_9 = arith.constant 0 : index
    %c0_10 = arith.constant 0 : index
    %9 = vector.load %arg5[%c0_9, %c0_10] : memref<32x32xbf16, #tpu.memory_space<vmem>>, vector<32x32xbf16>
    %cst_11 = arith.constant dense<0.000000e+00> : vector<16x32xf32>
    %10 = tpu.matmul %3, %9, %cst_11 {dimension_numbers = #tpu.dot_dimension_numbers<[1], [0], [0], [1], [0, 0, 1, 1], [], []>} : vector<16x32xbf16>, vector<32x32xbf16>, vector<16x32xf32> -> vector<16x32xf32>
    %c0_12 = arith.constant 0 : index
    %c0_13 = arith.constant 0 : index
    %11 = vector.load %arg6[%c0_12, %c0_13] : memref<1x32xf32, #tpu.memory_space<vmem>>, vector<1x32xf32>
    %12 = vector.broadcast %11 : vector<1x32xf32> to vector<16x32xf32>
    %13 = arith.addf %10, %12 : vector<16x32xf32>
    %c0_14 = arith.constant 0 : index
    %c0_15 = arith.constant 0 : index
    %14 = vector.load %arg7[%c0_14, %c0_15] : memref<32x32xbf16, #tpu.memory_space<vmem>>, vector<32x32xbf16>
    %cst_16 = arith.constant dense<0.000000e+00> : vector<16x32xf32>
    %15 = tpu.matmul %3, %14, %cst_16 {dimension_numbers = #tpu.dot_dimension_numbers<[1], [0], [0], [1], [0, 0, 1, 1], [], []>} : vector<16x32xbf16>, vector<32x32xbf16>, vector<16x32xf32> -> vector<16x32xf32>
    %c0_17 = arith.constant 0 : index
    %c0_18 = arith.constant 0 : index
    %16 = vector.load %arg8[%c0_17, %c0_18] : memref<1x32xf32, #tpu.memory_space<vmem>>, vector<1x32xf32>
    %17 = vector.broadcast %16 : vector<1x32xf32> to vector<16x32xf32>
    %18 = arith.addf %15, %17 : vector<16x32xf32>
    %19 = vector.extract_strided_slice %8 {offsets = [0, 0], sizes = [16, 8], strides = [1, 1]} : vector<16x32xf32> to vector<16x8xf32>
    %20 = vector.shape_cast %19 : vector<16x8xf32> to vector<1x16x8xf32>
    %21 = arith.truncf %20 : vector<1x16x8xf32> to vector<1x16x8xbf16>
    %22 = vector.extract_strided_slice %13 {offsets = [0, 0], sizes = [16, 8], strides = [1, 1]} : vector<16x32xf32> to vector<16x8xf32>
    %23 = vector.shape_cast %22 : vector<16x8xf32> to vector<1x16x8xf32>
    %24 = arith.truncf %23 : vector<1x16x8xf32> to vector<1x16x8xbf16>
    %25 = vector.extract_strided_slice %18 {offsets = [0, 0], sizes = [16, 8], strides = [1, 1]} : vector<16x32xf32> to vector<16x8xf32>
    %26 = vector.shape_cast %25 : vector<16x8xf32> to vector<1x16x8xf32>
    %27 = arith.truncf %26 : vector<1x16x8xf32> to vector<1x16x8xbf16>
    "tpu.trace_start"() <{level = 10 : i32, message = "bqd,bkd->bqk"}> : () -> ()
    %cst_19 = arith.constant dense<0.000000e+00> : vector<1x16x16xf32>
    %28 = tpu.matmul %21, %24, %cst_19 {dimension_numbers = #tpu.dot_dimension_numbers<[2], [2], [1], [1], [0, 0, 0, 1, 1, 1], [0], [0]>} : vector<1x16x8xbf16>, vector<1x16x8xbf16>, vector<1x16x16xf32> -> vector<1x16x16xf32>
    "tpu.trace_stop"() : () -> ()
    %cst_20 = arith.constant 0.353553385 : f32
    %29 = vector.broadcast %cst_20 : f32 to vector<1x16x16xf32>
    %30 = arith.mulf %28, %29 : vector<1x16x16xf32>
    %cst_21 = arith.constant dense<0xFF800000> : vector<1x16xf32>
    %31 = vector.multi_reduction <maximumf>, %30, %cst_21 [2] : vector<1x16x16xf32> to vector<1x16xf32>
    %32 = vector.shape_cast %31 : vector<1x16xf32> to vector<1x16x1xf32>
    %33 = vector.broadcast %32 : vector<1x16x1xf32> to vector<1x16x16xf32>
    %34 = arith.subf %30, %33 : vector<1x16x16xf32>
    %35 = math.exp %34 : vector<1x16x16xf32>
    %cst_22 = arith.constant dense<0.000000e+00> : vector<1x16xf32>
    %36 = vector.multi_reduction <add>, %35, %cst_22 [2] : vector<1x16x16xf32> to vector<1x16xf32>
    %37 = vector.shape_cast %36 : vector<1x16xf32> to vector<1x16x1xf32>
    %38 = tpu.reciprocal %37 {approx = true} : vector<1x16x1xf32> -> vector<1x16x1xf32>
    %39 = vector.broadcast %38 : vector<1x16x1xf32> to vector<1x16x16xf32>
    %40 = arith.mulf %35, %39 : vector<1x16x16xf32>
    %41 = arith.truncf %40 : vector<1x16x16xf32> to vector<1x16x16xbf16>
    "tpu.trace_start"() <{level = 10 : i32, message = "bqk,bkd->bqd"}> : () -> ()
    %cst_23 = arith.constant dense<0.000000e+00> : vector<1x16x8xf32>
    %42 = tpu.matmul %41, %27, %cst_23 {dimension_numbers = #tpu.dot_dimension_numbers<[2], [1], [1], [2], [0, 0, 0, 1, 1, 2], [0], [0]>} : vector<1x16x16xbf16>, vector<1x16x8xbf16>, vector<1x16x8xf32> -> vector<1x16x8xf32>
    "tpu.trace_stop"() : () -> ()
    %43 = vector.shape_cast %42 : vector<1x16x8xf32> to vector<16x8xf32>
    %44 = arith.truncf %43 : vector<16x8xf32> to vector<16x8xbf16>
    %c0_24 = arith.constant 0 : index
    %c0_25 = arith.constant 0 : index
    %45 = vector.load %arg14[%c0_24, %c0_25] : memref<16x32xbf16, #tpu.memory_space<vmem>>, vector<16x8xbf16>
    tpu.vector_store %arg14[%c0_24, %c0_25], %44 {strides = array<i32>} : memref<16x32xbf16, #tpu.memory_space<vmem>>, vector<16x8xbf16>,
    %46 = vector.extract_strided_slice %8 {offsets = [0, 8], sizes = [16, 8], strides = [1, 1]} : vector<16x32xf32> to vector<16x8xf32>
    %47 = vector.shape_cast %46 : vector<16x8xf32> to vector<1x16x8xf32>
    %48 = arith.truncf %47 : vector<1x16x8xf32> to vector<1x16x8xbf16>
    %49 = vector.extract_strided_slice %13 {offsets = [0, 8], sizes = [16, 8], strides = [1, 1]} : vector<16x32xf32> to vector<16x8xf32>
    %50 = vector.shape_cast %49 : vector<16x8xf32> to vector<1x16x8xf32>
    %51 = arith.truncf %50 : vector<1x16x8xf32> to vector<1x16x8xbf16>
    %52 = vector.extract_strided_slice %18 {offsets = [0, 8], sizes = [16, 8], strides = [1, 1]} : vector<16x32xf32> to vector<16x8xf32>
    %53 = vector.shape_cast %52 : vector<16x8xf32> to vector<1x16x8xf32>
    %54 = arith.truncf %53 : vector<1x16x8xf32> to vector<1x16x8xbf16>
    "tpu.trace_start"() <{level = 10 : i32, message = "bqd,bkd->bqk"}> : () -> ()
    %cst_26 = arith.constant dense<0.000000e+00> : vector<1x16x16xf32>
    %55 = tpu.matmul %48, %51, %cst_26 {dimension_numbers = #tpu.dot_dimension_numbers<[2], [2], [1], [1], [0, 0, 0, 1, 1, 1], [0], [0]>} : vector<1x16x8xbf16>, vector<1x16x8xbf16>, vector<1x16x16xf32> -> vector<1x16x16xf32>
    "tpu.trace_stop"() : () -> ()
    %cst_27 = arith.constant 0.353553385 : f32
    %56 = vector.broadcast %cst_27 : f32 to vector<1x16x16xf32>
    %57 = arith.mulf %55, %56 : vector<1x16x16xf32>
    %cst_28 = arith.constant dense<0xFF800000> : vector<1x16xf32>
    %58 = vector.multi_reduction <maximumf>, %57, %cst_28 [2] : vector<1x16x16xf32> to vector<1x16xf32>
    %59 = vector.shape_cast %58 : vector<1x16xf32> to vector<1x16x1xf32>
    %60 = vector.broadcast %59 : vector<1x16x1xf32> to vector<1x16x16xf32>
    %61 = arith.subf %57, %60 : vector<1x16x16xf32>
    %62 = math.exp %61 : vector<1x16x16xf32>
    %cst_29 = arith.constant dense<0.000000e+00> : vector<1x16xf32>
    %63 = vector.multi_reduction <add>, %62, %cst_29 [2] : vector<1x16x16xf32> to vector<1x16xf32>
    %64 = vector.shape_cast %63 : vector<1x16xf32> to vector<1x16x1xf32>
    %65 = tpu.reciprocal %64 {approx = true} : vector<1x16x1xf32> -> vector<1x16x1xf32>
    %66 = vector.broadcast %65 : vector<1x16x1xf32> to vector<1x16x16xf32>
    %67 = arith.mulf %62, %66 : vector<1x16x16xf32>
    %68 = arith.truncf %67 : vector<1x16x16xf32> to vector<1x16x16xbf16>
    "tpu.trace_start"() <{level = 10 : i32, message = "bqk,bkd->bqd"}> : () -> ()
    %cst_30 = arith.constant dense<0.000000e+00> : vector<1x16x8xf32>
    %69 = tpu.matmul %68, %54, %cst_30 {dimension_numbers = #tpu.dot_dimension_numbers<[2], [1], [1], [2], [0, 0, 0, 1, 1, 2], [0], [0]>} : vector<1x16x16xbf16>, vector<1x16x8xbf16>, vector<1x16x8xf32> -> vector<1x16x8xf32>
    "tpu.trace_stop"() : () -> ()
    %70 = vector.shape_cast %69 : vector<1x16x8xf32> to vector<16x8xf32>
    %71 = arith.truncf %70 : vector<16x8xf32> to vector<16x8xbf16>
    %c0_31 = arith.constant 0 : index
    %c8 = arith.constant 8 : index
    %72 = vector.load %arg14[%c0_31, %c8] : memref<16x32xbf16, #tpu.memory_space<vmem>>, vector<16x8xbf16>
    tpu.vector_store %arg14[%c0_31, %c8], %71 {strides = array<i32>} : memref<16x32xbf16, #tpu.memory_space<vmem>>, vector<16x8xbf16>,
    %73 = vector.extract_strided_slice %8 {offsets = [0, 16], sizes = [16, 8], strides = [1, 1]} : vector<16x32xf32> to vector<16x8xf32>
    %74 = vector.shape_cast %73 : vector<16x8xf32> to vector<1x16x8xf32>
    %75 = arith.truncf %74 : vector<1x16x8xf32> to vector<1x16x8xbf16>
    %76 = vector.extract_strided_slice %13 {offsets = [0, 16], sizes = [16, 8], strides = [1, 1]} : vector<16x32xf32> to vector<16x8xf32>
    %77 = vector.shape_cast %76 : vector<16x8xf32> to vector<1x16x8xf32>
    %78 = arith.truncf %77 : vector<1x16x8xf32> to vector<1x16x8xbf16>
    %79 = vector.extract_strided_slice %18 {offsets = [0, 16], sizes = [16, 8], strides = [1, 1]} : vector<16x32xf32> to vector<16x8xf32>
    %80 = vector.shape_cast %79 : vector<16x8xf32> to vector<1x16x8xf32>
    %81 = arith.truncf %80 : vector<1x16x8xf32> to vector<1x16x8xbf16>
    "tpu.trace_start"() <{level = 10 : i32, message = "bqd,bkd->bqk"}> : () -> ()
    %cst_32 = arith.constant dense<0.000000e+00> : vector<1x16x16xf32>
    %82 = tpu.matmul %75, %78, %cst_32 {dimension_numbers = #tpu.dot_dimension_numbers<[2], [2], [1], [1], [0, 0, 0, 1, 1, 1], [0], [0]>} : vector<1x16x8xbf16>, vector<1x16x8xbf16>, vector<1x16x16xf32> -> vector<1x16x16xf32>
    "tpu.trace_stop"() : () -> ()
    %cst_33 = arith.constant 0.353553385 : f32
    %83 = vector.broadcast %cst_33 : f32 to vector<1x16x16xf32>
    %84 = arith.mulf %82, %83 : vector<1x16x16xf32>
    %cst_34 = arith.constant dense<0xFF800000> : vector<1x16xf32>
    %85 = vector.multi_reduction <maximumf>, %84, %cst_34 [2] : vector<1x16x16xf32> to vector<1x16xf32>
    %86 = vector.shape_cast %85 : vector<1x16xf32> to vector<1x16x1xf32>
    %87 = vector.broadcast %86 : vector<1x16x1xf32> to vector<1x16x16xf32>
    %88 = arith.subf %84, %87 : vector<1x16x16xf32>
    %89 = math.exp %88 : vector<1x16x16xf32>
    %cst_35 = arith.constant dense<0.000000e+00> : vector<1x16xf32>
    %90 = vector.multi_reduction <add>, %89, %cst_35 [2] : vector<1x16x16xf32> to vector<1x16xf32>
    %91 = vector.shape_cast %90 : vector<1x16xf32> to vector<1x16x1xf32>
    %92 = tpu.reciprocal %91 {approx = true} : vector<1x16x1xf32> -> vector<1x16x1xf32>
    %93 = vector.broadcast %92 : vector<1x16x1xf32> to vector<1x16x16xf32>
    %94 = arith.mulf %89, %93 : vector<1x16x16xf32>
    %95 = arith.truncf %94 : vector<1x16x16xf32> to vector<1x16x16xbf16>
    "tpu.trace_start"() <{level = 10 : i32, message = "bqk,bkd->bqd"}> : () -> ()
    %cst_36 = arith.constant dense<0.000000e+00> : vector<1x16x8xf32>
    %96 = tpu.matmul %95, %81, %cst_36 {dimension_numbers = #tpu.dot_dimension_numbers<[2], [1], [1], [2], [0, 0, 0, 1, 1, 2], [0], [0]>} : vector<1x16x16xbf16>, vector<1x16x8xbf16>, vector<1x16x8xf32> -> vector<1x16x8xf32>
    "tpu.trace_stop"() : () -> ()
    %97 = vector.shape_cast %96 : vector<1x16x8xf32> to vector<16x8xf32>
    %98 = arith.truncf %97 : vector<16x8xf32> to vector<16x8xbf16>
    %c0_37 = arith.constant 0 : index
    %c16 = arith.constant 16 : index
    %99 = vector.load %arg14[%c0_37, %c16] : memref<16x32xbf16, #tpu.memory_space<vmem>>, vector<16x8xbf16>
    tpu.vector_store %arg14[%c0_37, %c16], %98 {strides = array<i32>} : memref<16x32xbf16, #tpu.memory_space<vmem>>, vector<16x8xbf16>,
    %100 = vector.extract_strided_slice %8 {offsets = [0, 24], sizes = [16, 8], strides = [1, 1]} : vector<16x32xf32> to vector<16x8xf32>
    %101 = vector.shape_cast %100 : vector<16x8xf32> to vector<1x16x8xf32>
    %102 = arith.truncf %101 : vector<1x16x8xf32> to vector<1x16x8xbf16>
    %103 = vector.extract_strided_slice %13 {offsets = [0, 24], sizes = [16, 8], strides = [1, 1]} : vector<16x32xf32> to vector<16x8xf32>
    %104 = vector.shape_cast %103 : vector<16x8xf32> to vector<1x16x8xf32>
    %105 = arith.truncf %104 : vector<1x16x8xf32> to vector<1x16x8xbf16>
    %106 = vector.extract_strided_slice %18 {offsets = [0, 24], sizes = [16, 8], strides = [1, 1]} : vector<16x32xf32> to vector<16x8xf32>
    %107 = vector.shape_cast %106 : vector<16x8xf32> to vector<1x16x8xf32>
    %108 = arith.truncf %107 : vector<1x16x8xf32> to vector<1x16x8xbf16>
    "tpu.trace_start"() <{level = 10 : i32, message = "bqd,bkd->bqk"}> : () -> ()
    %cst_38 = arith.constant dense<0.000000e+00> : vector<1x16x16xf32>
    %109 = tpu.matmul %102, %105, %cst_38 {dimension_numbers = #tpu.dot_dimension_numbers<[2], [2], [1], [1], [0, 0, 0, 1, 1, 1], [0], [0]>} : vector<1x16x8xbf16>, vector<1x16x8xbf16>, vector<1x16x16xf32> -> vector<1x16x16xf32>
    "tpu.trace_stop"() : () -> ()
    %cst_39 = arith.constant 0.353553385 : f32
    %110 = vector.broadcast %cst_39 : f32 to vector<1x16x16xf32>
    %111 = arith.mulf %109, %110 : vector<1x16x16xf32>
    %cst_40 = arith.constant dense<0xFF800000> : vector<1x16xf32>
    %112 = vector.multi_reduction <maximumf>, %111, %cst_40 [2] : vector<1x16x16xf32> to vector<1x16xf32>
    %113 = vector.shape_cast %112 : vector<1x16xf32> to vector<1x16x1xf32>
    %114 = vector.broadcast %113 : vector<1x16x1xf32> to vector<1x16x16xf32>
    %115 = arith.subf %111, %114 : vector<1x16x16xf32>
    %116 = math.exp %115 : vector<1x16x16xf32>
    %cst_41 = arith.constant dense<0.000000e+00> : vector<1x16xf32>
    %117 = vector.multi_reduction <add>, %116, %cst_41 [2] : vector<1x16x16xf32> to vector<1x16xf32>
    %118 = vector.shape_cast %117 : vector<1x16xf32> to vector<1x16x1xf32>
    %119 = tpu.reciprocal %118 {approx = true} : vector<1x16x1xf32> -> vector<1x16x1xf32>
    %120 = vector.broadcast %119 : vector<1x16x1xf32> to vector<1x16x16xf32>
    %121 = arith.mulf %116, %120 : vector<1x16x16xf32>
    %122 = arith.truncf %121 : vector<1x16x16xf32> to vector<1x16x16xbf16>
    "tpu.trace_start"() <{level = 10 : i32, message = "bqk,bkd->bqd"}> : () -> ()
    %cst_42 = arith.constant dense<0.000000e+00> : vector<1x16x8xf32>
    %123 = tpu.matmul %122, %108, %cst_42 {dimension_numbers = #tpu.dot_dimension_numbers<[2], [1], [1], [2], [0, 0, 0, 1, 1, 2], [0], [0]>} : vector<1x16x16xbf16>, vector<1x16x8xbf16>, vector<1x16x8xf32> -> vector<1x16x8xf32>
    "tpu.trace_stop"() : () -> ()
    %124 = vector.shape_cast %123 : vector<1x16x8xf32> to vector<16x8xf32>
    %125 = arith.truncf %124 : vector<16x8xf32> to vector<16x8xbf16>
    %c0_43 = arith.constant 0 : index
    %c24 = arith.constant 24 : index
    %126 = vector.load %arg14[%c0_43, %c24] : memref<16x32xbf16, #tpu.memory_space<vmem>>, vector<16x8xbf16>
    tpu.vector_store %arg14[%c0_43, %c24], %125 {strides = array<i32>} : memref<16x32xbf16, #tpu.memory_space<vmem>>, vector<16x8xbf16>,
    %c0_44 = arith.constant 0 : index
    %c0_45 = arith.constant 0 : index
    %127 = vector.load %arg14[%c0_44, %c0_45] : memref<16x32xbf16, #tpu.memory_space<vmem>>, vector<16x32xbf16>
    %c0_46 = arith.constant 0 : index
    %c0_47 = arith.constant 0 : index
    %128 = vector.load %arg9[%c0_46, %c0_47] : memref<32x32xbf16, #tpu.memory_space<vmem>>, vector<32x32xbf16>
    %cst_48 = arith.constant dense<0.000000e+00> : vector<16x32xf32>
    %129 = tpu.matmul %127, %128, %cst_48 {dimension_numbers = #tpu.dot_dimension_numbers<[1], [0], [0], [1], [0, 0, 1, 1], [], []>} : vector<16x32xbf16>, vector<32x32xbf16>, vector<16x32xf32> -> vector<16x32xf32>
    %c0_49 = arith.constant 0 : index
    %c0_50 = arith.constant 0 : index
    %130 = vector.load %arg10[%c0_49, %c0_50] : memref<1x32xf32, #tpu.memory_space<vmem>>, vector<1x32xf32>
    %131 = vector.broadcast %130 : vector<1x32xf32> to vector<16x32xf32>
    %132 = arith.addf %129, %131 : vector<16x32xf32>
    %133 = arith.extf %1 : vector<16x32xbf16> to vector<16x32xf32>
    %134 = arith.addf %132, %133 : vector<16x32xf32>
    %c0_51 = arith.constant 0 : index
    %c0_52 = arith.constant 0 : index
    %135 = vector.load %arg11[%c0_51, %c0_52] : memref<1x32xf32, #tpu.memory_space<vmem>>, vector<1x32xf32>
    %c0_53 = arith.constant 0 : index
    %c0_54 = arith.constant 0 : index
    %136 = vector.load %arg12[%c0_53, %c0_54] : memref<1x32xf32, #tpu.memory_space<vmem>>, vector<1x32xf32>
    %cst_55 = arith.constant dense<0.000000e+00> : vector<16xf32>
    %137 = vector.multi_reduction <add>, %134, %cst_55 [1] : vector<16x32xf32> to vector<16xf32>
    %138 = vector.shape_cast %137 : vector<16xf32> to vector<16x1xf32>
    %cst_56 = arith.constant 3.200000e+01 : f32
    %139 = vector.broadcast %cst_56 : f32 to vector<16x1xf32>
    %140 = arith.divf %138, %139 : vector<16x1xf32>
    %141 = vector.broadcast %140 : vector<16x1xf32> to vector<16x32xf32>
    %142 = arith.subf %134, %141 : vector<16x32xf32>
    %143 = arith.mulf %142, %142 : vector<16x32xf32>
    %cst_57 = arith.constant dense<0.000000e+00> : vector<16xf32>
    %144 = vector.multi_reduction <add>, %143, %cst_57 [1] : vector<16x32xf32> to vector<16xf32>
    %145 = vector.shape_cast %144 : vector<16xf32> to vector<16x1xf32>
    %cst_58 = arith.constant 3.200000e+01 : f32
    %146 = vector.broadcast %cst_58 : f32 to vector<16x1xf32>
    %147 = arith.divf %145, %146 : vector<16x1xf32>
    %148 = vector.broadcast %140 : vector<16x1xf32> to vector<16x32xf32>
    %149 = arith.subf %134, %148 : vector<16x32xf32>
    %cst_59 = arith.constant 9.99999974E-6 : f32
    %150 = vector.broadcast %cst_59 : f32 to vector<16x1xf32>
    %151 = arith.addf %147, %150 : vector<16x1xf32>
    %152 = math.rsqrt %151 : vector<16x1xf32>
    %153 = vector.broadcast %152 : vector<16x1xf32> to vector<16x32xf32>
    %154 = arith.mulf %149, %153 : vector<16x32xf32>
    %155 = vector.broadcast %135 : vector<1x32xf32> to vector<16x32xf32>
    %156 = arith.mulf %154, %155 : vector<16x32xf32>
    %157 = vector.broadcast %136 : vector<1x32xf32> to vector<16x32xf32>
    %158 = arith.addf %156, %157 : vector<16x32xf32>
    %159 = vector.shape_cast %158 : vector<16x32xf32> to vector<1x16x32xf32>
    %160 = arith.truncf %159 : vector<1x16x32xf32> to vector<1x16x32xbf16>
    %c0_60 = arith.constant 0 : index
    %c0_61 = arith.constant 0 : index
    %c0_62 = arith.constant 0 : index
    %161 = vector.load %arg13[%c0_60, %c0_61, %c0_62] : memref<1x16x32xbf16, #tpu.memory_space<vmem>>, vector<1x16x32xbf16>
    tpu.vector_store %arg13[%c0_60, %c0_61, %c0_62], %160 {strides = array<i32>} : memref<1x16x32xbf16, #tpu.memory_space<vmem>>, vector<1x16x32xbf16>,
    return
  }
  func.func @transform_0(%arg0: i32) -> (i32, i32, i32) {
    %c0_i32 = arith.constant 0 : i32
    %c0_i32_0 = arith.constant 0 : i32
    %c0_i32_1 = arith.constant 0 : i32
    return %arg0, %c0_i32, %c0_i32_0 : i32, i32, i32
  }
  func.func @transform_1(%arg0: i32) -> (i32, i32, i32) {
    %c0_i32 = arith.constant 0 : i32
    %c0_i32_0 = arith.constant 0 : i32
    %c0_i32_1 = arith.constant 0 : i32
    return %arg0, %c0_i32, %c0_i32_0 : i32, i32, i32
  }
  func.func @transform_2(%arg0: i32) -> (i32, i32) {
    %c0_i32 = arith.constant 0 : i32
    %c0_i32_0 = arith.constant 0 : i32
    %c0_i32_1 = arith.constant 0 : i32
    return %c0_i32, %c0_i32_0 : i32, i32
  }
  func.func @transform_3(%arg0: i32) -> (i32, i32) {
    %c0_i32 = arith.constant 0 : i32
    %c0_i32_0 = arith.constant 0 : i32
    %c0_i32_1 = arith.constant 0 : i32
    return %c0_i32, %c0_i32_0 : i32, i32
  }
  func.func @transform_4(%arg0: i32) -> (i32, i32) {
    %c0_i32 = arith.constant 0 : i32
    %c0_i32_0 = arith.constant 0 : i32
    %c0_i32_1 = arith.constant 0 : i32
    return %c0_i32, %c0_i32_0 : i32, i32
  }
  func.func @transform_5(%arg0: i32) -> (i32, i32) {
    %c0_i32 = arith.constant 0 : i32
    %c0_i32_0 = arith.constant 0 : i32
    %c0_i32_1 = arith.constant 0 : i32
    return %c0_i32, %c0_i32_0 : i32, i32
  }
  func.func @transform_6(%arg0: i32) -> (i32, i32) {
    %c0_i32 = arith.constant 0 : i32
    %c0_i32_0 = arith.constant 0 : i32
    %c0_i32_1 = arith.constant 0 : i32
    return %c0_i32, %c0_i32_0 : i32, i32
  }
  func.func @transform_7(%arg0: i32) -> (i32, i32) {
    %c0_i32 = arith.constant 0 : i32
    %c0_i32_0 = arith.constant 0 : i32
    %c0_i32_1 = arith.constant 0 : i32
    return %c0_i32, %c0_i32_0 : i32, i32
  }
  func.func @transform_8(%arg0: i32) -> (i32, i32) {
    %c0_i32 = arith.constant 0 : i32
    %c0_i32_0 = arith.constant 0 : i32
    %c0_i32_1 = arith.constant 0 : i32
    return %c0_i32, %c0_i32_0 : i32, i32
  }
  func.func @transform_9(%arg0: i32) -> (i32, i32) {
    %c0_i32 = arith.constant 0 : i32
    %c0_i32_0 = arith.constant 0 : i32
    %c0_i32_1 = arith.constant 0 : i32
    return %c0_i32, %c0_i32_0 : i32, i32
  }
  func.func @transform_10(%arg0: i32) -> (i32, i32) {
    %c0_i32 = arith.constant 0 : i32
    %c0_i32_0 = arith.constant 0 : i32
    %c0_i32_1 = arith.constant 0 : i32
    return %c0_i32, %c0_i32_0 : i32, i32
  }
  func.func @transform_11(%arg0: i32) -> (i32, i32) {
    %c0_i32 = arith.constant 0 : i32
    %c0_i32_0 = arith.constant 0 : i32
    %c0_i32_1 = arith.constant 0 : i32
    return %c0_i32, %c0_i32_0 : i32, i32
  }
  func.func @transform_12(%arg0: i32) -> (i32, i32, i32) {
    %c0_i32 = arith.constant 0 : i32
    %c0_i32_0 = arith.constant 0 : i32
    %c0_i32_1 = arith.constant 0 : i32
    return %arg0, %c0_i32, %c0_i32_0 : i32, i32, i32
  }
}

module attributes {stable_mosaic.version = 11 : i64} {
  func.func @_patch_embed_kernel(%arg0: i32, %arg1: memref<1x16x64xbf16, #tpu.memory_space<vmem>>, %arg2: memref<64x32xbf16, #tpu.memory_space<vmem>>, %arg3: memref<1x32xf32, #tpu.memory_space<vmem>>, %arg4: memref<1x32xf32, #tpu.memory_space<vmem>>, %arg5: memref<1x32xf32, #tpu.memory_space<vmem>>, %arg6: memref<16x32xf32, #tpu.memory_space<vmem>>, %arg7: memref<1x16x32xbf16, #tpu.memory_space<vmem>>) attributes {dimension_semantics = [#tpu.dimension_semantics<parallel>], iteration_bounds = array<i64: 2>, scalar_prefetch = 0 : i64, scratch_operands = 0 : i64, tpu.core_type = #tpu.core_type<tc>, window_params = [{transform_indices = @transform_0, window_bounds = array<i64: 1, 16, 64>}, {pipeline_mode = #tpu.pipeline_mode<synchronous>, transform_indices = @transform_1, window_bounds = array<i64: 64, 32>}, {pipeline_mode = #tpu.pipeline_mode<synchronous>, transform_indices = @transform_2, window_bounds = array<i64: 1, 32>}, {pipeline_mode = #tpu.pipeline_mode<synchronous>, transform_indices = @transform_3, window_bounds = array<i64: 1, 32>}, {pipeline_mode = #tpu.pipeline_mode<synchronous>, transform_indices = @transform_4, window_bounds = array<i64: 1, 32>}, {pipeline_mode = #tpu.pipeline_mode<synchronous>, transform_indices = @transform_5, window_bounds = array<i64: 16, 32>}, {transform_indices = @transform_6, window_bounds = array<i64: 1, 16, 32>}]} {
    %c0 = arith.constant 0 : index
    %c0_0 = arith.constant 0 : index
    %c0_1 = arith.constant 0 : index
    %0 = vector.load %arg1[%c0, %c0_0, %c0_1] : memref<1x16x64xbf16, #tpu.memory_space<vmem>>, vector<1x16x64xbf16>
    %1 = vector.shape_cast %0 : vector<1x16x64xbf16> to vector<16x64xbf16>
    %c0_2 = arith.constant 0 : index
    %c0_3 = arith.constant 0 : index
    %2 = vector.load %arg2[%c0_2, %c0_3] : memref<64x32xbf16, #tpu.memory_space<vmem>>, vector<64x32xbf16>
    %cst = arith.constant dense<0.000000e+00> : vector<16x32xf32>
    %3 = tpu.matmul %1, %2, %cst {dimension_numbers = #tpu.dot_dimension_numbers<[1], [0], [0], [1], [0, 0, 1, 1], [], []>} : vector<16x64xbf16>, vector<64x32xbf16>, vector<16x32xf32> -> vector<16x32xf32>
    %c0_4 = arith.constant 0 : index
    %c0_5 = arith.constant 0 : index
    %4 = vector.load %arg3[%c0_4, %c0_5] : memref<1x32xf32, #tpu.memory_space<vmem>>, vector<1x32xf32>
    %5 = vector.broadcast %4 : vector<1x32xf32> to vector<16x32xf32>
    %6 = arith.addf %3, %5 : vector<16x32xf32>
    %c0_6 = arith.constant 0 : index
    %c0_7 = arith.constant 0 : index
    %7 = vector.load %arg4[%c0_6, %c0_7] : memref<1x32xf32, #tpu.memory_space<vmem>>, vector<1x32xf32>
    %c0_8 = arith.constant 0 : index
    %c0_9 = arith.constant 0 : index
    %8 = vector.load %arg5[%c0_8, %c0_9] : memref<1x32xf32, #tpu.memory_space<vmem>>, vector<1x32xf32>
    %cst_10 = arith.constant dense<0.000000e+00> : vector<16xf32>
    %9 = vector.multi_reduction <add>, %6, %cst_10 [1] : vector<16x32xf32> to vector<16xf32>
    %10 = vector.shape_cast %9 : vector<16xf32> to vector<16x1xf32>
    %cst_11 = arith.constant 3.200000e+01 : f32
    %11 = vector.broadcast %cst_11 : f32 to vector<16x1xf32>
    %12 = arith.divf %10, %11 : vector<16x1xf32>
    %13 = vector.broadcast %12 : vector<16x1xf32> to vector<16x32xf32>
    %14 = arith.subf %6, %13 : vector<16x32xf32>
    %15 = arith.mulf %14, %14 : vector<16x32xf32>
    %cst_12 = arith.constant dense<0.000000e+00> : vector<16xf32>
    %16 = vector.multi_reduction <add>, %15, %cst_12 [1] : vector<16x32xf32> to vector<16xf32>
    %17 = vector.shape_cast %16 : vector<16xf32> to vector<16x1xf32>
    %cst_13 = arith.constant 3.200000e+01 : f32
    %18 = vector.broadcast %cst_13 : f32 to vector<16x1xf32>
    %19 = arith.divf %17, %18 : vector<16x1xf32>
    %20 = vector.broadcast %12 : vector<16x1xf32> to vector<16x32xf32>
    %21 = arith.subf %6, %20 : vector<16x32xf32>
    %cst_14 = arith.constant 9.99999974E-6 : f32
    %22 = vector.broadcast %cst_14 : f32 to vector<16x1xf32>
    %23 = arith.addf %19, %22 : vector<16x1xf32>
    %24 = math.rsqrt %23 : vector<16x1xf32>
    %25 = vector.broadcast %24 : vector<16x1xf32> to vector<16x32xf32>
    %26 = arith.mulf %21, %25 : vector<16x32xf32>
    %27 = vector.broadcast %7 : vector<1x32xf32> to vector<16x32xf32>
    %28 = arith.mulf %26, %27 : vector<16x32xf32>
    %29 = vector.broadcast %8 : vector<1x32xf32> to vector<16x32xf32>
    %30 = arith.addf %28, %29 : vector<16x32xf32>
    %31 = vector.shape_cast %30 : vector<16x32xf32> to vector<1x16x32xf32>
    %c0_15 = arith.constant 0 : index
    %c0_16 = arith.constant 0 : index
    %32 = vector.load %arg6[%c0_15, %c0_16] : memref<16x32xf32, #tpu.memory_space<vmem>>, vector<16x32xf32>
    %33 = vector.shape_cast %32 : vector<16x32xf32> to vector<1x16x32xf32>
    %34 = arith.addf %31, %33 : vector<1x16x32xf32>
    %35 = arith.truncf %34 : vector<1x16x32xf32> to vector<1x16x32xbf16>
    %c0_17 = arith.constant 0 : index
    %c0_18 = arith.constant 0 : index
    %c0_19 = arith.constant 0 : index
    %36 = vector.load %arg7[%c0_17, %c0_18, %c0_19] : memref<1x16x32xbf16, #tpu.memory_space<vmem>>, vector<1x16x32xbf16>
    tpu.vector_store %arg7[%c0_17, %c0_18, %c0_19], %35 {strides = array<i32>} : memref<1x16x32xbf16, #tpu.memory_space<vmem>>, vector<1x16x32xbf16>,
    return
  }
  func.func @transform_0(%arg0: i32) -> (i32, i32, i32) {
    %c0_i32 = arith.constant 0 : i32
    %c0_i32_0 = arith.constant 0 : i32
    %c0_i32_1 = arith.constant 0 : i32
    return %arg0, %c0_i32, %c0_i32_0 : i32, i32, i32
  }
  func.func @transform_1(%arg0: i32) -> (i32, i32) {
    %c0_i32 = arith.constant 0 : i32
    %c0_i32_0 = arith.constant 0 : i32
    %c0_i32_1 = arith.constant 0 : i32
    return %c0_i32, %c0_i32_0 : i32, i32
  }
  func.func @transform_2(%arg0: i32) -> (i32, i32) {
    %c0_i32 = arith.constant 0 : i32
    %c0_i32_0 = arith.constant 0 : i32
    %c0_i32_1 = arith.constant 0 : i32
    return %c0_i32, %c0_i32_0 : i32, i32
  }
  func.func @transform_3(%arg0: i32) -> (i32, i32) {
    %c0_i32 = arith.constant 0 : i32
    %c0_i32_0 = arith.constant 0 : i32
    %c0_i32_1 = arith.constant 0 : i32
    return %c0_i32, %c0_i32_0 : i32, i32
  }
  func.func @transform_4(%arg0: i32) -> (i32, i32) {
    %c0_i32 = arith.constant 0 : i32
    %c0_i32_0 = arith.constant 0 : i32
    %c0_i32_1 = arith.constant 0 : i32
    return %c0_i32, %c0_i32_0 : i32, i32
  }
  func.func @transform_5(%arg0: i32) -> (i32, i32) {
    %c0_i32 = arith.constant 0 : i32
    %c0_i32_0 = arith.constant 0 : i32
    %c0_i32_1 = arith.constant 0 : i32
    return %c0_i32, %c0_i32_0 : i32, i32
  }
  func.func @transform_6(%arg0: i32) -> (i32, i32, i32) {
    %c0_i32 = arith.constant 0 : i32
    %c0_i32_0 = arith.constant 0 : i32
    %c0_i32_1 = arith.constant 0 : i32
    return %arg0, %c0_i32, %c0_i32_0 : i32, i32, i32
  }
}

module attributes {stable_mosaic.version = 11 : i64} {
  func.func @_ffn_block_kernel(%arg0: i32, %arg1: memref<16x32xbf16, #tpu.memory_space<vmem>>, %arg2: memref<32x2048xbf16, #tpu.memory_space<vmem>>, %arg3: memref<1x2048xf32, #tpu.memory_space<vmem>>, %arg4: memref<2048x32xbf16, #tpu.memory_space<vmem>>, %arg5: memref<1x32xf32, #tpu.memory_space<vmem>>, %arg6: memref<1x32xf32, #tpu.memory_space<vmem>>, %arg7: memref<1x32xf32, #tpu.memory_space<vmem>>, %arg8: memref<16x32xbf16, #tpu.memory_space<vmem>>) attributes {dimension_semantics = [#tpu.dimension_semantics<parallel>], iteration_bounds = array<i64: 2>, scalar_prefetch = 0 : i64, scratch_operands = 0 : i64, tpu.core_type = #tpu.core_type<tc>, window_params = [{transform_indices = @transform_0, window_bounds = array<i64: 16, 32>}, {pipeline_mode = #tpu.pipeline_mode<synchronous>, transform_indices = @transform_1, window_bounds = array<i64: 32, 2048>}, {pipeline_mode = #tpu.pipeline_mode<synchronous>, transform_indices = @transform_2, window_bounds = array<i64: 1, 2048>}, {pipeline_mode = #tpu.pipeline_mode<synchronous>, transform_indices = @transform_3, window_bounds = array<i64: 2048, 32>}, {pipeline_mode = #tpu.pipeline_mode<synchronous>, transform_indices = @transform_4, window_bounds = array<i64: 1, 32>}, {pipeline_mode = #tpu.pipeline_mode<synchronous>, transform_indices = @transform_5, window_bounds = array<i64: 1, 32>}, {pipeline_mode = #tpu.pipeline_mode<synchronous>, transform_indices = @transform_6, window_bounds = array<i64: 1, 32>}, {transform_indices = @transform_7, window_bounds = array<i64: 16, 32>}]} {
    %c0 = arith.constant 0 : index
    %c0_0 = arith.constant 0 : index
    %0 = vector.load %arg1[%c0, %c0_0] : memref<16x32xbf16, #tpu.memory_space<vmem>>, vector<16x32xbf16>
    %c0_1 = arith.constant 0 : index
    %c0_2 = arith.constant 0 : index
    %1 = vector.load %arg2[%c0_1, %c0_2] : memref<32x2048xbf16, #tpu.memory_space<vmem>>, vector<32x2048xbf16>
    %cst = arith.constant dense<0.000000e+00> : vector<16x2048xf32>
    %2 = tpu.matmul %0, %1, %cst {dimension_numbers = #tpu.dot_dimension_numbers<[1], [0], [0], [1], [0, 0, 1, 1], [], []>} : vector<16x32xbf16>, vector<32x2048xbf16>, vector<16x2048xf32> -> vector<16x2048xf32>
    %c0_3 = arith.constant 0 : index
    %c0_4 = arith.constant 0 : index
    %3 = vector.load %arg3[%c0_3, %c0_4] : memref<1x2048xf32, #tpu.memory_space<vmem>>, vector<1x2048xf32>
    %4 = vector.broadcast %3 : vector<1x2048xf32> to vector<16x2048xf32>
    %5 = arith.addf %2, %4 : vector<16x2048xf32>
    %cst_5 = arith.constant 0.000000e+00 : f32
    %6 = vector.broadcast %cst_5 : f32 to vector<16x2048xf32>
    %7 = arith.maximumf %5, %6 : vector<16x2048xf32>
    %c0_6 = arith.constant 0 : index
    %c0_7 = arith.constant 0 : index
    %8 = vector.load %arg4[%c0_6, %c0_7] : memref<2048x32xbf16, #tpu.memory_space<vmem>>, vector<2048x32xbf16>
    %9 = arith.truncf %7 : vector<16x2048xf32> to vector<16x2048xbf16>
    %cst_8 = arith.constant dense<0.000000e+00> : vector<16x32xf32>
    %10 = tpu.matmul %9, %8, %cst_8 {dimension_numbers = #tpu.dot_dimension_numbers<[1], [0], [0], [1], [0, 0, 1, 1], [], []>} : vector<16x2048xbf16>, vector<2048x32xbf16>, vector<16x32xf32> -> vector<16x32xf32>
    %c0_9 = arith.constant 0 : index
    %c0_10 = arith.constant 0 : index
    %11 = vector.load %arg5[%c0_9, %c0_10] : memref<1x32xf32, #tpu.memory_space<vmem>>, vector<1x32xf32>
    %12 = vector.broadcast %11 : vector<1x32xf32> to vector<16x32xf32>
    %13 = arith.addf %10, %12 : vector<16x32xf32>
    %14 = arith.extf %0 : vector<16x32xbf16> to vector<16x32xf32>
    %15 = arith.addf %13, %14 : vector<16x32xf32>
    %c0_11 = arith.constant 0 : index
    %c0_12 = arith.constant 0 : index
    %16 = vector.load %arg6[%c0_11, %c0_12] : memref<1x32xf32, #tpu.memory_space<vmem>>, vector<1x32xf32>
    %c0_13 = arith.constant 0 : index
    %c0_14 = arith.constant 0 : index
    %17 = vector.load %arg7[%c0_13, %c0_14] : memref<1x32xf32, #tpu.memory_space<vmem>>, vector<1x32xf32>
    %cst_15 = arith.constant dense<0.000000e+00> : vector<16xf32>
    %18 = vector.multi_reduction <add>, %15, %cst_15 [1] : vector<16x32xf32> to vector<16xf32>
    %19 = vector.shape_cast %18 : vector<16xf32> to vector<16x1xf32>
    %cst_16 = arith.constant 3.200000e+01 : f32
    %20 = vector.broadcast %cst_16 : f32 to vector<16x1xf32>
    %21 = arith.divf %19, %20 : vector<16x1xf32>
    %22 = vector.broadcast %21 : vector<16x1xf32> to vector<16x32xf32>
    %23 = arith.subf %15, %22 : vector<16x32xf32>
    %24 = arith.mulf %23, %23 : vector<16x32xf32>
    %cst_17 = arith.constant dense<0.000000e+00> : vector<16xf32>
    %25 = vector.multi_reduction <add>, %24, %cst_17 [1] : vector<16x32xf32> to vector<16xf32>
    %26 = vector.shape_cast %25 : vector<16xf32> to vector<16x1xf32>
    %cst_18 = arith.constant 3.200000e+01 : f32
    %27 = vector.broadcast %cst_18 : f32 to vector<16x1xf32>
    %28 = arith.divf %26, %27 : vector<16x1xf32>
    %29 = vector.broadcast %21 : vector<16x1xf32> to vector<16x32xf32>
    %30 = arith.subf %15, %29 : vector<16x32xf32>
    %cst_19 = arith.constant 9.99999974E-6 : f32
    %31 = vector.broadcast %cst_19 : f32 to vector<16x1xf32>
    %32 = arith.addf %28, %31 : vector<16x1xf32>
    %33 = math.rsqrt %32 : vector<16x1xf32>
    %34 = vector.broadcast %33 : vector<16x1xf32> to vector<16x32xf32>
    %35 = arith.mulf %30, %34 : vector<16x32xf32>
    %36 = vector.broadcast %16 : vector<1x32xf32> to vector<16x32xf32>
    %37 = arith.mulf %35, %36 : vector<16x32xf32>
    %38 = vector.broadcast %17 : vector<1x32xf32> to vector<16x32xf32>
    %39 = arith.addf %37, %38 : vector<16x32xf32>
    %40 = arith.truncf %39 : vector<16x32xf32> to vector<16x32xbf16>
    %c0_20 = arith.constant 0 : index
    %c0_21 = arith.constant 0 : index
    %41 = vector.load %arg8[%c0_20, %c0_21] : memref<16x32xbf16, #tpu.memory_space<vmem>>, vector<16x32xbf16>
    tpu.vector_store %arg8[%c0_20, %c0_21], %40 {strides = array<i32>} : memref<16x32xbf16, #tpu.memory_space<vmem>>, vector<16x32xbf16>,
    return
  }
  func.func @transform_0(%arg0: i32) -> (i32, i32) {
    %c0_i32 = arith.constant 0 : i32
    %c0_i32_0 = arith.constant 0 : i32
    return %arg0, %c0_i32 : i32, i32
  }
  func.func @transform_1(%arg0: i32) -> (i32, i32) {
    %c0_i32 = arith.constant 0 : i32
    %c0_i32_0 = arith.constant 0 : i32
    %c0_i32_1 = arith.constant 0 : i32
    return %c0_i32, %c0_i32_0 : i32, i32
  }
  func.func @transform_2(%arg0: i32) -> (i32, i32) {
    %c0_i32 = arith.constant 0 : i32
    %c0_i32_0 = arith.constant 0 : i32
    %c0_i32_1 = arith.constant 0 : i32
    return %c0_i32, %c0_i32_0 : i32, i32
  }
  func.func @transform_3(%arg0: i32) -> (i32, i32) {
    %c0_i32 = arith.constant 0 : i32
    %c0_i32_0 = arith.constant 0 : i32
    %c0_i32_1 = arith.constant 0 : i32
    return %c0_i32, %c0_i32_0 : i32, i32
  }
  func.func @transform_4(%arg0: i32) -> (i32, i32) {
    %c0_i32 = arith.constant 0 : i32
    %c0_i32_0 = arith.constant 0 : i32
    %c0_i32_1 = arith.constant 0 : i32
    return %c0_i32, %c0_i32_0 : i32, i32
  }
  func.func @transform_5(%arg0: i32) -> (i32, i32) {
    %c0_i32 = arith.constant 0 : i32
    %c0_i32_0 = arith.constant 0 : i32
    %c0_i32_1 = arith.constant 0 : i32
    return %c0_i32, %c0_i32_0 : i32, i32
  }
  func.func @transform_6(%arg0: i32) -> (i32, i32) {
    %c0_i32 = arith.constant 0 : i32
    %c0_i32_0 = arith.constant 0 : i32
    %c0_i32_1 = arith.constant 0 : i32
    return %c0_i32, %c0_i32_0 : i32, i32
  }
  func.func @transform_7(%arg0: i32) -> (i32, i32) {
    %c0_i32 = arith.constant 0 : i32
    %c0_i32_0 = arith.constant 0 : i32
    return %arg0, %c0_i32 : i32, i32
  }
}

module attributes {stable_mosaic.version = 11 : i64} {
  func.func @_layernorm_kernel(%arg0: i32, %arg1: memref<16x32xbf16, #tpu.memory_space<vmem>>, %arg2: memref<1x32xf32, #tpu.memory_space<vmem>>, %arg3: memref<1x32xf32, #tpu.memory_space<vmem>>, %arg4: memref<16x32xf32, #tpu.memory_space<vmem>>) attributes {dimension_semantics = [#tpu.dimension_semantics<parallel>], iteration_bounds = array<i64: 2>, scalar_prefetch = 0 : i64, scratch_operands = 0 : i64, tpu.core_type = #tpu.core_type<tc>, window_params = [{transform_indices = @transform_0, window_bounds = array<i64: 16, 32>}, {pipeline_mode = #tpu.pipeline_mode<synchronous>, transform_indices = @transform_1, window_bounds = array<i64: 1, 32>}, {pipeline_mode = #tpu.pipeline_mode<synchronous>, transform_indices = @transform_2, window_bounds = array<i64: 1, 32>}, {transform_indices = @transform_3, window_bounds = array<i64: 16, 32>}]} {
    %c0 = arith.constant 0 : index
    %c0_0 = arith.constant 0 : index
    %0 = vector.load %arg1[%c0, %c0_0] : memref<16x32xbf16, #tpu.memory_space<vmem>>, vector<16x32xbf16>
    %1 = arith.extf %0 : vector<16x32xbf16> to vector<16x32xf32>
    %c0_1 = arith.constant 0 : index
    %c0_2 = arith.constant 0 : index
    %2 = vector.load %arg2[%c0_1, %c0_2] : memref<1x32xf32, #tpu.memory_space<vmem>>, vector<1x32xf32>
    %c0_3 = arith.constant 0 : index
    %c0_4 = arith.constant 0 : index
    %3 = vector.load %arg3[%c0_3, %c0_4] : memref<1x32xf32, #tpu.memory_space<vmem>>, vector<1x32xf32>
    %cst = arith.constant dense<0.000000e+00> : vector<16xf32>
    %4 = vector.multi_reduction <add>, %1, %cst [1] : vector<16x32xf32> to vector<16xf32>
    %5 = vector.shape_cast %4 : vector<16xf32> to vector<16x1xf32>
    %cst_5 = arith.constant 3.200000e+01 : f32
    %6 = vector.broadcast %cst_5 : f32 to vector<16x1xf32>
    %7 = arith.divf %5, %6 : vector<16x1xf32>
    %8 = vector.broadcast %7 : vector<16x1xf32> to vector<16x32xf32>
    %9 = arith.subf %1, %8 : vector<16x32xf32>
    %10 = arith.mulf %9, %9 : vector<16x32xf32>
    %cst_6 = arith.constant dense<0.000000e+00> : vector<16xf32>
    %11 = vector.multi_reduction <add>, %10, %cst_6 [1] : vector<16x32xf32> to vector<16xf32>
    %12 = vector.shape_cast %11 : vector<16xf32> to vector<16x1xf32>
    %cst_7 = arith.constant 3.200000e+01 : f32
    %13 = vector.broadcast %cst_7 : f32 to vector<16x1xf32>
    %14 = arith.divf %12, %13 : vector<16x1xf32>
    %15 = vector.broadcast %7 : vector<16x1xf32> to vector<16x32xf32>
    %16 = arith.subf %1, %15 : vector<16x32xf32>
    %cst_8 = arith.constant 9.99999974E-6 : f32
    %17 = vector.broadcast %cst_8 : f32 to vector<16x1xf32>
    %18 = arith.addf %14, %17 : vector<16x1xf32>
    %19 = math.rsqrt %18 : vector<16x1xf32>
    %20 = vector.broadcast %19 : vector<16x1xf32> to vector<16x32xf32>
    %21 = arith.mulf %16, %20 : vector<16x32xf32>
    %22 = vector.broadcast %2 : vector<1x32xf32> to vector<16x32xf32>
    %23 = arith.mulf %21, %22 : vector<16x32xf32>
    %24 = vector.broadcast %3 : vector<1x32xf32> to vector<16x32xf32>
    %25 = arith.addf %23, %24 : vector<16x32xf32>
    %c0_9 = arith.constant 0 : index
    %c0_10 = arith.constant 0 : index
    %26 = vector.load %arg4[%c0_9, %c0_10] : memref<16x32xf32, #tpu.memory_space<vmem>>, vector<16x32xf32>
    tpu.vector_store %arg4[%c0_9, %c0_10], %25 {strides = array<i32>} : memref<16x32xf32, #tpu.memory_space<vmem>>, vector<16x32xf32>,
    return
  }
  func.func @transform_0(%arg0: i32) -> (i32, i32) {
    %c0_i32 = arith.constant 0 : i32
    %c0_i32_0 = arith.constant 0 : i32
    return %arg0, %c0_i32 : i32, i32
  }
  func.func @transform_1(%arg0: i32) -> (i32, i32) {
    %c0_i32 = arith.constant 0 : i32
    %c0_i32_0 = arith.constant 0 : i32
    %c0_i32_1 = arith.constant 0 : i32
    return %c0_i32, %c0_i32_0 : i32, i32
  }
  func.func @transform_2(%arg0: i32) -> (i32, i32) {
    %c0_i32 = arith.constant 0 : i32
    %c0_i32_0 = arith.constant 0 : i32
    %c0_i32_1 = arith.constant 0 : i32
    return %c0_i32, %c0_i32_0 : i32, i32
  }
  func.func @transform_3(%arg0: i32) -> (i32, i32) {
    %c0_i32 = arith.constant 0 : i32
    %c0_i32_0 = arith.constant 0 : i32
    return %arg0, %c0_i32 : i32, i32
  }
}

</mosaic_0001>

<bundles_post_ra>
// kernel: perceiver_image_encoder_forward.8
= control target key start
LH: loop header
LB: loop body
LE: loop exit
PB: predicated region body
PF: predicated region fallthrough
CT: control target
= control target key end

     0   :  { %s567_s21 = smov 0   ;;  %s622_s0 = inlined_call_operand.vmem [shape: bf16[2,16,64], index: 0, kind: input, shape index: {}]   ;;  %s623_s1 = inlined_call_operand.vmem [shape: bf16[64,32], index: 1, kind: input, shape index: {}]   ;;  %s624_s2 = inlined_call_operand.vmem [shape: f32[1,32], index: 2, kind: input, shape index: {}]   ;;  %s625_s3 = inlined_call_operand.vmem [shape: f32[1,32], index: 3, kind: input, shape index: {}]   ;;  %s626_s4 = inlined_call_operand.vmem [shape: f32[1,32], index: 4, kind: input, shape index: {}]   ;;  %s627_s5 = inlined_call_operand.vmem [shape: f32[16,32], index: 5, kind: input, shape index: {}]   ;;  %s628_s6 = inlined_call_operand.vmem [shape: bf16[2,16,32], index: 6, kind: output, shape index: {}]  }
   0x1 LB: > { %s460_s22 = sadd.s32 4294967295, %s528_s21   ;;  %p464_p0 = scmp.ge.s32.totalorder %s528_s21, 1  ;;  %s528_s21 = sphi %s567_s21, %s16_s21  }
   0x2   : > { %p212_p1 = scmp.lt.s32.totalorder %s528_s21, 3 }
   0x4   : > { %p213_p2 = pnand %p464_p0, %p212_p1 }
   0x5   : > { %v513_v0 = vld [vmem:[%s623_s1] sm:$0xff] (!%p213_p2)   ;;  %v530_v1 = vmov (!%p213_p2), 0.0   ;;  %v514_v2 = vld [vmem:[%s623_s1 + $0x8] sm:$0xff] (!%p213_p2)   ;;  %vm531_vm0 = vmmov (!%p213_p2), 0   ;;  %p242_p3 = scmp.lt.s32.totalorder (!%p213_p2), %s460_s22, 1  ;;  %v515_v3 = vld [vmem:[%s623_s1 + $0x10] sm:$0xff] (!%p213_p2)  }
   0x6   : > { %216 = sbr.rel (%p213_p2) target bundleno = 558 (0x22e), region = 44  ;;  %491 = vmatprep.subr.bf16.mxu0 (!%p213_p2), %v530_v1  ;;  %499 = vmatprep.mubr.msk.bf16.mxu0 (!%p213_p2), %vm531_vm0, %v530_v1  ;;  %v516_v4 = vld [vmem:[%s623_s1 + $0x18] sm:$0xff] (!%p213_p2)   ;;  %vm299_vm1 = vcmask (!%p213_p2), 523264   ;;  %v469_v6 = vld [vmem:[%s624_s2] ss:$0 sm:$0xff] (!%p213_p2)  ;;  %vm346_vm2 = vcmask (!%p213_p2), 261120  }
   0x7   : > { %492 = vmatpush3.bf16.msra.mxu0 (!%p213_p2), %v513_v0  ;;  %v476_v32 = vld [vmem:[%s625_s3] ss:$0 sm:$0xff] (!%p213_p2)  ;;  %vm402_vm3 = vcmask (!%p213_p2), 257024   ;;  %v391_v42 = vld [vmem:[%s627_s5 + $0x8] sm:$0xff] (!%p213_p2) }
   0x8   : > { %493 = vmatprep.subr.bf16.mxu0 (!%p213_p2), %v530_v1  ;;  %v477_v34 = vld [vmem:[%s626_s4] ss:$0 sm:$0xff] (!%p213_p2) }
   0x9   : > { %v390_v37 = vld [vmem:[%s627_s5] sm:$0xff] (!%p213_p2) }
   0xb   : > { %494 = vmatpush3.bf16.msra.mxu0 (!%p213_p2), %v514_v2 }
   0xc   : > { %495 = vmatprep.subr.bf16.mxu0 (!%p213_p2), %v530_v1 }
   0xd   : > { %s630_s22 = smov (!%p242_p3, %s460_s22), 1 }
   0xe   : > { %s482_s29 = sshll.u32 %s630_s22, 3 }
   0xf   : > { %s246_s8 = scalar_lea.vmem %s622_s0, %s482_s29  ;;  %496 = vmatpush3.bf16.msra.mxu0 %v515_v3  ;;  %s251_s23 = scalar_lea.vmem %s628_s6, %s482_s29 }
  0x10   : > { %497 = vmatprep.subr.bf16.mxu0 %v530_v1  ;;  %v517_v5 = vld [vmem:[%s246_s8] sm:$0xff]  }
  0x13   : > { %498 = vmatpush3.bf16.msra.mxu0 %v516_v4 }
  0x16   : > { %500 = vmatmul.mubr.msk.bf16.vlgmr.msra.gmra.mrb[0].mxu0 %vm299_vm1, %v517_v5 }
  0xe9   : > { %v337_v7 = vpop.f32.mrb[0].mxu0 }
  0xea   : > { %v338_v8 = vadd.f32 %v469_v6, %v337_v7  ;;  %v501_v9 = vpop.f32.mrb[1].mxu0 }
  0xeb   : > { %v340_v10 = vpop.f32.mrb[2].mxu0 }
  0xec   : > { %v341_v11 = vadd.f32 %v469_v6, %v340_v10  ;;  %v502_v12 = vpop.f32.mrb[3].mxu0  ;;  %v347_v13 = vsel %vm346_vm2, %v338_v8, 0.0 }
  0xed   : > { %348 = vadd.xlane.f32.xlu0 %v347_v13 }
  0xee   : > { %v350_v14 = vsel %vm346_vm2, %v341_v11, 0.0 }
  0xf1   : > { %351 = vadd.xlane.f32.xlu0 %v350_v14 }
 0x17a   : > { %v349_v15 = vpop.xlane.xlu0 %348 }
 0x17b   : > { %v354_v16 = vmul.f32 0.03125, %v349_v15 }
 0x17d   : > { %v356_v17 = vsub.f32 %v338_v8, %v354_v16 }
 0x17e   : > { %v352_v18 = vpop.xlane.xlu0 %351 }
 0x17f   : > { %v355_v19 = vmul.f32 0.03125, %v352_v18  ;;  %v358_v20 = vmul.f32 %v356_v17, %v356_v17 }
 0x181   : > { %v357_v21 = vsub.f32 %v341_v11, %v355_v19  ;;  %v360_v22 = vsel %vm346_vm2, %v358_v20, 0.0 }
 0x182   : > { %361 = vadd.xlane.f32.xlu1 %v360_v22 }
 0x183   : > { %v359_v23 = vmul.f32 %v357_v21, %v357_v21 }
 0x185   : > { %v363_v24 = vsel %vm346_vm2, %v359_v23, 0.0 }
 0x186   : > { %364 = vadd.xlane.f32.xlu1 %v363_v24 }
 0x20f   : > { %v362_v25 = vpop.xlane.xlu1 %361 }
 0x210   : > { %v366_v26 = vmul.f32 0.03125, %v362_v25 }
 0x212   : > { %v368_v27 = vadd.f32 1e-05, %v366_v26 }
 0x213   : > { %v365_v28 = vpop.xlane.xlu1 %364 }
 0x214   : > { %518 = vrsqrt.f32 %v368_v27  ;;  %v367_v29 = vmul.f32 0.03125, %v365_v28 }
 0x216   : > { %v369_v30 = vadd.f32 1e-05, %v367_v29 }
 0x218   : > { %520 = vrsqrt.f32 %v369_v30 }
 0x21e   : > { %v519_v31 = vpop.eup %518 }
 0x21f   : > { %v372_v33 = vmul.f32 %v519_v31, %v356_v17 }
 0x221   : > { %v380_v35 = vmul.f32 %v476_v32, %v372_v33 }
 0x222   : > { %v521_v36 = vpop.eup %520 }
 0x223   : > { %v388_v38 = vadd.f32 %v477_v34, %v380_v35  ;;  %v373_v39 = vmul.f32 %v521_v36, %v357_v21 }
 0x225   : > { %v392_v40 = vadd.f32 %v390_v37, %v388_v38  ;;  %v381_v41 = vmul.f32 %v476_v32, %v373_v39 }
 0x227   : > { %v484_v43 = vpack.c.bf16 %v392_v40, %v392_v40  ;;  %v389_v44 = vadd.f32 %v477_v34, %v381_v41 }
 0x229   : > { %403 = vst.msk [vmem:[%s251_s23] sm:$0xf] %vm402_vm3, %v484_v43  ;;  %v393_v45 = vadd.f32 %v391_v42, %v389_v44 }
 0x22b   : > { %v485_v46 = vpack.c.bf16 %v393_v45, %v393_v45 }
 0x22d   : > { %404 = vst.msk [vmem:[%s251_s23 + $0x4] sm:$0xf] %vm402_vm3, %v485_v46 }
 0x22e PF: > { %s16_s21 = sadd.s32 1, %s528_s21  }
 0x22f   : > { %p13_p4 = scmp.ge.s32.totalorder %s16_s21, 4  }
 0x231   :  { %15 = sbr.rel (!%p13_p4) target bundleno = 1 (0x1), region = 74 }

// kernel: perceiver_image_encoder_forward.9
= control target key start
LH: loop header
LB: loop body
LE: loop exit
PB: predicated region body
PF: predicated region fallthrough
CT: control target
= control target key end

     0   :  { %s1659_s21 = smov 0   ;;  %s1823_s0 = inlined_call_operand.vmem [shape: bf16[2,16,32], index: 0, kind: input, shape index: {}, may-alias: {0,1}]   ;;  %s1824_s1 = inlined_call_operand.vmem [shape: bf16[2,16,32], index: 1, kind: input, shape index: {}, may-alias: {0,1}]   ;;  %s1825_s2 = inlined_call_operand.vmem [shape: bf16[32,32], index: 2, kind: input, shape index: {}]   ;;  %s1826_s3 = inlined_call_operand.vmem [shape: f32[1,32], index: 3, kind: input, shape index: {}]   ;;  %s1827_s4 = inlined_call_operand.vmem [shape: bf16[32,32], index: 4, kind: input, shape index: {}]   ;;  %s1828_s5 = inlined_call_operand.vmem [shape: f32[1,32], index: 5, kind: input, shape index: {}]   ;;  %s1829_s6 = inlined_call_operand.vmem [shape: bf16[32,32], index: 6, kind: input, shape index: {}]   ;;  %s1830_s7 = inlined_call_operand.vmem [shape: f32[1,32], index: 7, kind: input, shape index: {}]   ;;  %s1831_s8 = inlined_call_operand.vmem [shape: bf16[32,32], index: 8, kind: input, shape index: {}]   ;;  %s1832_s9 = inlined_call_operand.vmem [shape: f32[1,32], index: 9, kind: input, shape index: {}]   ;;  %s1833_s10 = inlined_call_operand.vmem [shape: f32[1,32], index: 10, kind: input, shape index: {}]   ;;  %s1834_s11 = inlined_call_operand.vmem [shape: f32[1,32], index: 11, kind: input, shape index: {}]   ;;  %s1835_s12 = inlined_call_operand.vmem [shape: bf16[2,16,32], index: 12, kind: output, shape index: {}]  }
   0x1 LB: > { %s1359_s22 = sadd.s32 4294967295, %s1584_s21   ;;  %p1363_p0 = scmp.ge.s32.totalorder %s1584_s21, 1  ;;  %s1584_s21 = sphi %s1659_s21, %s22_s21  }
   0x2   : > { %p372_p1 = scmp.lt.s32.totalorder %s1584_s21, 3 }
   0x4   : > { %p373_p2 = pnand %p1363_p0, %p372_p1 }
   0x5   : > { %v1531_v0 = vld [vmem:[%s1827_s4] sm:$0xff] (!%p373_p2)   ;;  %v1586_v1 = vmov (!%p373_p2), 0.0   ;;  %v1533_v3 = vld [vmem:[%s1827_s4 + $0x8] sm:$0xff] (!%p373_p2)   ;;  %vm1587_vm0 = vmmov (!%p373_p2), 0   ;;  %p419_p3 = scmp.lt.s32.totalorder (!%p373_p2), %s1359_s22, 1  ;;  %vm467_vm1 = vcmask (!%p373_p2), 261120  }
   0x6   : > { %376 = sbr.rel (%p373_p2) target bundleno = 1783 (0x6f7), region = 68  ;;  %1443 = vmatprep.subr.bf16.mxu1 (!%p373_p2), %v1586_v1  ;;  %1435 = vmatprep.subr.bf16.mxu0 (!%p373_p2), %v1586_v1  ;;  %v1532_v2 = vld [vmem:[%s1825_s2] sm:$0xff] (!%p373_p2)   ;;  %v1535_v4 = vld [vmem:[%s1825_s2 + $0x8] sm:$0xff] (!%p373_p2)   ;;  %vm651_vm2 = vcmask (!%p373_p2), 64512   ;;  %s1588_s25 = smov (!%p373_p2), 112   ;;  %vm701_vm3 = vcmask (!%p373_p2), 130048  }
   0x7   : > { %1444 = vmatpush3.bf16.msra.mxu1 (!%p373_p2), %v1531_v0  ;;  %1447 = vmatprep.mubr.msk.bf16.mxu1 (!%p373_p2), %vm1587_vm0, %v1586_v1  ;;  %v1375_v7 = vld [vmem:[%s1828_s5] ss:$0 sm:$0xff] (!%p373_p2)  ;;  %s1589_s26 = smov (!%p373_p2), 120   ;;  %s1590_s27 = smov (!%p373_p2), 104   ;;  %v1538_v25 = vld [vmem:[%s1829_s6 + $0x8] sm:$0xff] (!%p373_p2)   ;;  %vm902_vm4 = vcmask (!%p373_p2), 130112  }
   0x8   : > { %1445 = vmatprep.subr.bf16.mxu1 (!%p373_p2), %v1586_v1  ;;  %1436 = vmatpush3.bf16.msra.mxu0 (!%p373_p2), %v1532_v2  ;;  %v1370_v9 = vld [vmem:[%s1826_s3] ss:$0 sm:$0xff] (!%p373_p2)  ;;  %s1591_s17 = smov (!%p373_p2), 8   ;;  %s1592_s23 = smov (!%p373_p2), 16   ;;  %vm1032_vm5 = vcmask (!%p373_p2), 195712   ;;  %vm1162_vm6 = vcmask (!%p373_p2), 261312  }
   0x9   : > { %1437 = vmatprep.subr.bf16.mxu0 (!%p373_p2), %v1586_v1  ;;  %1439 = vmatprep.mubr.msk.bf16.mxu0 (!%p373_p2), %vm1587_vm0, %v1586_v1  ;;  %v1537_v24 = vld [vmem:[%s1829_s6] sm:$0xff] (!%p373_p2)   ;;  %s1593_s24 = smov (!%p373_p2), 24   ;;  %vm1289_vm7 = vcmask (!%p373_p2), 257024  }
   0xa   : > { %v1380_v43 = vld [vmem:[%s1830_s7] ss:$0 sm:$0xff] (!%p373_p2) }
   0xb   : > { %1446 = vmatpush3.bf16.msra.mxu1 (!%p373_p2), %v1533_v3 }
   0xc   : > { %1438 = vmatpush3.bf16.msra.mxu0 (!%p373_p2), %v1535_v4  ;;  %1459 = vmatprep.subr.bf16.mxu1 (!%p373_p2), %v1586_v1 }
   0xd   : > { %s1837_s22 = smov (!%p419_p3, %s1359_s22), 1  ;;  %1451 = vmatprep.subr.bf16.mxu0 %v1586_v1 }
   0xe   : > { %s1687_s13 = sshll.u32 %s1837_s22, 3 }
   0xf   : > { %s428_s16 = scalar_lea.vmem %s1824_s1, %s1687_s13  ;;  %s423_s19 = scalar_lea.vmem %s1823_s0, %s1687_s13 }
  0x10   : > { %v1534_v5 = vld [vmem:[%s428_s16] sm:$0xff]   ;;  %s433_s16 = scalar_lea.vmem %s1835_s12, %s1687_s13 }
  0x11   : > { %v1699_v6 = vld [vmem:[%s423_s19] sm:$0xff]   ;;  %1448 = vmatmul.mubr.msk.bf16.vlgmr.msra.gmra.mrb[0].mxu1 %vm467_vm1, %v1534_v5 }
  0x12   : > { %1461 = vmatprep.mubr.msk.bf16.mxu1 %vm1587_vm0, %v1586_v1  ;;  %1440 = vmatmul.mubr.msk.bf16.vlgmr.msra.gmra.mrb[0].mxu0 %vm467_vm1, %v1699_v6 }
  0x13   : > { %1455 = vmatprep.mubr.msk.bf16.mxu0 %vm1587_vm0, %v1586_v1  ;;  %1452 = vmatpush3.bf16.msra.mxu0 %v1537_v24 }
  0x14   : > { %1453 = vmatprep.subr.bf16.mxu0 %v1586_v1 }
  0x17   : > { %1454 = vmatpush3.bf16.msra.mxu0 %v1538_v25 }
  0x18   : > { %1465 = vmatprep.subr.bf16.mxu0 %v1586_v1 }
  0x1a   : > { %1456 = vmatmul.mubr.msk.bf16.vlgmr.msra.gmra.mrb[4].mxu0 %vm467_vm1, %v1534_v5 }
  0x1b   : > { %1467 = vmatprep.mubr.msk.bf16.mxu0 %vm1587_vm0, %v1586_v1 }
  0xe4   : > { %v577_v8 = vpop.f32.mrb[0].mxu1 }
  0xe5   : > { %v1449_v10 = vpop.f32.mrb[1].mxu1  ;;  %v505_v12 = vpop.f32.mrb[0].mxu0  ;;  %v578_v13 = vadd.f32 %v1375_v7, %v577_v8 }
  0xe6   : > { %v580_v11 = vpop.f32.mrb[2].mxu1  ;;  %v506_v16 = vadd.f32 %v1370_v9, %v505_v12  ;;  %v1441_v17 = vpop.f32.mrb[1].mxu0 }
  0xe7   : > { %v581_v14 = vadd.f32 %v1375_v7, %v580_v11  ;;  %v1450_v15 = vpop.f32.mrb[3].mxu1  ;;  %v508_v18 = vpop.f32.mrb[2].mxu0 }
  0xe8   : > { %v509_v20 = vadd.f32 %v1370_v9, %v508_v18  ;;  %v1442_v21 = vpop.f32.mrb[3].mxu0 }
  0xe9   : > { %v649_v19 = vpack.c.bf16 %v581_v14, %v578_v13 }
  0xea   : > { %v648_v22 = vpack.c.bf16 %v509_v20, %v506_v16 }
  0xeb   : > { %906 = vrot.lane.b32.xlu1 %v649_v19, %s1588_s25  ;;  %775 = vrot.lane.b32.xlu0 %v649_v19, %s1589_s26  ;;  %v656_v23 = vsel %vm651_vm2, %v649_v19, 0 }
  0xec   : > { %1460 = vmatpush3.bf16.xpose.msra.mxu1 %v656_v23 }
  0xed   : > { %1471 = vmatprep.subr.bf16.mxu1 %v1586_v1  ;;  %v641_v44 = vpop.f32.mrb[4].mxu0 }
  0xee   : > { %v642_v45 = vadd.f32 %v1380_v43, %v641_v44  ;;  %v1457_v46 = vpop.f32.mrb[5].mxu0 }
  0xef   : > { %904 = vrot.lane.b32.xlu1 %v648_v22, %s1588_s25  ;;  %772 = vrot.lane.b32.xlu0 %v648_v22, %s1589_s26  ;;  %v644_v47 = vpop.f32.mrb[6].mxu0 }
  0xf0   : > { %v645_v48 = vadd.f32 %v1380_v43, %v644_v47  ;;  %v1458_v49 = vpop.f32.mrb[7].mxu0 }
  0xf2   : > { %v1756_v50 = vpack.c.bf16 %v645_v48, %v642_v45 }
  0xf3   : > { %1034 = vrot.lane.b32.xlu1 %v648_v22, %s1590_s27  ;;  %1036 = vrot.lane.b32.xlu0 %v649_v19, %s1590_s27 }
  0xf4   : > { %1462 = vmatmul.mubr.msk.bf16.vlgmr.msra.gmra.mrb[4].mxu1 %vm651_vm2, %v648_v22  ;;  %1466 = vmatpush3.bf16.msra.mxu0 %v1756_v50 }
  0xf5   : > { %1473 = vmatprep.mubr.msk.bf16.mxu1 %vm1587_vm0, %v1586_v1  ;;  %1477 = vmatprep.subr.bf16.mxu0 %v1586_v1 }
 0x15d   : > { %v776_v26 = vpop.permute.xlu0 %775  ;;  %v907_v28 = vpop.permute.xlu1 %906 }
 0x15e   : > { %v781_v27 = vsel %vm651_vm2, %v776_v26, 0  ;;  %v912_v30 = vsel %vm651_vm2, %v907_v28, 0 }
 0x15f   : > { %1472 = vmatpush3.bf16.xpose.msra.mxu1 %v781_v27 }
 0x160   : > { %1483 = vmatprep.subr.bf16.mxu1 %v1586_v1 }
 0x161   : > { %v773_v29 = vpop.permute.xlu0 %772  ;;  %v905_v32 = vpop.permute.xlu1 %904 }
 0x165   : > { %v1037_v31 = vpop.permute.xlu0 %1036  ;;  %v1035_v34 = vpop.permute.xlu1 %1034 }
 0x166   : > { %1474 = vmatmul.mubr.msk.bf16.vlgmr.msra.gmra.mrb[8].mxu1 %vm651_vm2, %v773_v29  ;;  %v1042_v33 = vsel %vm651_vm2, %v1037_v31, 0 }
 0x167   : > { %1484 = vmatpush3.bf16.xpose.msra.mxu1 %v912_v30  ;;  %1485 = vmatprep.mubr.msk.bf16.mxu1 %vm1587_vm0, %v1586_v1 }
 0x168   : > { %1495 = vmatprep.subr.bf16.mxu1 %v1586_v1 }
 0x16e   : > { %1486 = vmatmul.mubr.msk.bf16.vlgmr.msra.gmra.mrb[12].mxu1 %vm651_vm2, %v905_v32 }
 0x16f   : > { %1496 = vmatpush3.bf16.xpose.msra.mxu1 %v1042_v33  ;;  %1497 = vmatprep.mubr.msk.bf16.mxu1 %vm1587_vm0, %v1586_v1 }
 0x170   : > { %1507 = vmatprep.subr.bf16.mxu1 %v1586_v1 }
 0x176   : > { %1498 = vmatmul.mubr.msk.bf16.vlgmr.msra.gmra.mrb[16].mxu1 %vm651_vm2, %v1035_v34 }
 0x177   : > { %1511 = vmatprep.mubr.msk.bf16.mxu1 %vm1587_vm0, %v1586_v1 }
 0x1c7   : > { %v692_v35 = vpop.f32.mrb[4].mxu1 }
 0x1c8   : > { %v699_v36 = vmul.f32 0.35355338, %v692_v35  ;;  %v1463_v37 = vpop.f32.mrb[5].mxu1 }
 0x1c9   : > { %v695_v38 = vpop.f32.mrb[6].mxu1 }
 0x1ca   : > { %v700_v39 = vmul.f32 0.35355338, %v695_v38  ;;  %v1464_v40 = vpop.f32.mrb[7].mxu1  ;;  %v702_v41 = vsel %vm701_vm3, %v699_v36, -inf }
 0x1cb   : > { %703 = vmax.xlane.f32.xlu0 %v702_v41 }
 0x1cc   : > { %v705_v42 = vsel %vm701_vm3, %v700_v39, -inf }
 0x1cd   : > { %706 = vmax.xlane.f32.xlu1 %v705_v42 }
 0x239   : > { %v817_v51 = vpop.f32.mrb[8].mxu1 }
 0x23a   : > { %v824_v52 = vmul.f32 0.35355338, %v817_v51  ;;  %v1475_v53 = vpop.f32.mrb[9].mxu1 }
 0x23b   : > { %v820_v54 = vpop.f32.mrb[10].mxu1 }
 0x23c   : > { %v825_v55 = vmul.f32 0.35355338, %v820_v54  ;;  %v1476_v56 = vpop.f32.mrb[11].mxu1  ;;  %v826_v57 = vsel %vm701_vm3, %v824_v52, -inf }
 0x23d   : > { %827 = vmax.xlane.f32.xlu0 %v826_v57 }
 0x23e   : > { %v829_v58 = vsel %vm701_vm3, %v825_v55, -inf }
 0x241   : > { %830 = vmax.xlane.f32.xlu0 %v829_v58  ;;  %v948_v59 = vpop.f32.mrb[12].mxu1 }
 0x242   : > { %v955_v60 = vmul.f32 0.35355338, %v948_v59  ;;  %v1487_v61 = vpop.f32.mrb[13].mxu1 }
 0x243   : > { %v951_v62 = vpop.f32.mrb[14].mxu1 }
 0x244   : > { %v956_v63 = vmul.f32 0.35355338, %v951_v62  ;;  %v1488_v0 = vpop.f32.mrb[15].mxu1  ;;  %v957_v2 = vsel %vm701_vm3, %v955_v60, -inf }
 0x245   : > { %958 = vmax.xlane.f32.xlu1 %v957_v2 }
 0x246   : > { %v960_v3 = vsel %vm701_vm3, %v956_v63, -inf }
 0x247   : > { %961 = vmax.xlane.f32.xlu0 %v960_v3 }
 0x249   : > { %v1078_v4 = vpop.f32.mrb[16].mxu1 }
 0x24a   : > { %v1085_v5 = vmul.f32 0.35355338, %v1078_v4  ;;  %v1499_v7 = vpop.f32.mrb[17].mxu1 }
 0x24b   : > { %v1081_v8 = vpop.f32.mrb[18].mxu1 }
 0x24c   : > { %v1086_v9 = vmul.f32 0.35355338, %v1081_v8  ;;  %v1500_v10 = vpop.f32.mrb[19].mxu1  ;;  %v1087_v11 = vsel %vm701_vm3, %v1085_v5, -inf }
 0x24d   : > { %1088 = vmax.xlane.f32.xlu1 %v1087_v11 }
 0x24e   : > { %v1090_v12 = vsel %vm701_vm3, %v1086_v9, -inf }
 0x24f   : > { %1091 = vmax.xlane.f32.xlu0 %v1090_v12 }
 0x258   : > { %v704_v13 = vpop.xlane.xlu0 %703 }
 0x259   : > { %v708_v14 = vsub.f32 %v699_v36, %v704_v13 }
 0x25a   : > { %v707_v15 = vpop.xlane.xlu1 %706 }
 0x25b   : > { %v710_v16 = vmul.f32 1.442695, %v708_v14  ;;  %v709_v17 = vsub.f32 %v700_v39, %v707_v15 }
 0x25d   : > { %1542 = vpow2.f32 %v710_v16  ;;  %v712_v18 = vmul.f32 1.442695, %v709_v17 }
 0x25f   : > { %1544 = vpow2.f32 %v712_v18 }
 0x267   : > { %v1543_v19 = vpop.eup %1542 }
 0x268   : > { %v714_v20 = vsel %vm701_vm3, %v1543_v19, 0.0 }
 0x269   : > { %v1545_v21 = vpop.eup %1544  ;;  %715 = vadd.xlane.f32.xlu1 %v714_v20 }
 0x26a   : > { %v717_v22 = vsel %vm701_vm3, %v1545_v21, 0.0 }
 0x26b   : > { %718 = vadd.xlane.f32.xlu0 %v717_v22 }
 0x27a   : > { %850 = vrot.lane.b32.xlu1 %v1756_v50, %s1589_s26 }
 0x2ca   : > { %v828_v23 = vpop.xlane.xlu0 %827 }
 0x2cb   : > { %v832_v24 = vsub.f32 %v824_v52, %v828_v23 }
 0x2cd   : > { %v834_v25 = vmul.f32 1.442695, %v832_v24 }
 0x2ce   : > { %v831_v26 = vpop.xlane.xlu0 %830 }
 0x2cf   : > { %1546 = vpow2.f32 %v834_v25  ;;  %v833_v27 = vsub.f32 %v825_v55, %v831_v26 }
 0x2d1   : > { %v836_v28 = vmul.f32 1.442695, %v833_v27 }
 0x2d2   : > { %v959_v29 = vpop.xlane.xlu1 %958 }
 0x2d3   : > { %1548 = vpow2.f32 %v836_v28  ;;  %v963_v30 = vsub.f32 %v955_v60, %v959_v29 }
 0x2d4   : > { %v962_v31 = vpop.xlane.xlu0 %961 }
 0x2d5   : > { %v965_v32 = vmul.f32 1.442695, %v963_v30  ;;  %v964_v33 = vsub.f32 %v956_v63, %v962_v31 }
 0x2d7   : > { %1550 = vpow2.f32 %v965_v32  ;;  %v967_v34 = vmul.f32 1.442695, %v964_v33  ;;  %v1539_v33 = vld [vmem:[%s1831_s8] sm:$0xff]  }
 0x2d8   : > { %1508 = vmatpush3.bf16.msra.mxu1 %v1539_v33 }
 0x2d9   : > { %v1547_v35 = vpop.eup %1546  ;;  %1552 = vpow2.f32 %v967_v34  ;;  %1509 = vmatprep.subr.bf16.mxu1 %v1586_v1 }
 0x2da   : > { %v1089_v36 = vpop.xlane.xlu1 %1088  ;;  %v838_v37 = vsel %vm701_vm3, %v1547_v35, 0.0 }
 0x2db   : > { %v1093_v38 = vsub.f32 %v1085_v5, %v1089_v36  ;;  %839 = vadd.xlane.f32.xlu1 %v838_v37  ;;  %v1540_v36 = vld [vmem:[%s1831_s8 + $0x8] sm:$0xff]  }
 0x2dc   : > { %v1092_v39 = vpop.xlane.xlu0 %1091  ;;  %1510 = vmatpush3.bf16.msra.mxu1 %v1540_v36 }
 0x2dd   : > { %v1549_v40 = vpop.eup %1548  ;;  %v1095_v41 = vmul.f32 1.442695, %v1093_v38  ;;  %v1094_v42 = vsub.f32 %v1086_v9, %v1092_v39 }
 0x2de   : > { %v841_v43 = vsel %vm701_vm3, %v1549_v40, 0.0 }
 0x2df   : > { %1554 = vpow2.f32 %v1095_v41  ;;  %v1097_v44 = vmul.f32 1.442695, %v1094_v42  ;;  %842 = vadd.xlane.f32.xlu0 %v841_v43 }
 0x2e1   : > { %v1551_v45 = vpop.eup %1550  ;;  %1556 = vpow2.f32 %v1097_v44 }
 0x2e2   : > { %v969_v46 = vsel %vm701_vm3, %v1551_v45, 0.0 }
 0x2e3   : > { %v1553_v47 = vpop.eup %1552  ;;  %970 = vadd.xlane.f32.xlu1 %v969_v46 }
 0x2e4   : > { %v972_v48 = vsel %vm701_vm3, %v1553_v47, 0.0 }
 0x2e5   : > { %973 = vadd.xlane.f32.xlu0 %v972_v48  ;;  %v1232_v48 = vunpack.c.l.bf16 %v1699_v6 }
 0x2e9   : > { %v1555_v49 = vpop.eup %1554 }
 0x2ea   : > { %v1099_v51 = vsel %vm701_vm3, %v1555_v49, 0.0 }
 0x2eb   : > { %v1557_v52 = vpop.eup %1556  ;;  %1100 = vadd.xlane.f32.xlu1 %v1099_v51 }
 0x2ec   : > { %v1102_v53 = vsel %vm701_vm3, %v1557_v52, 0.0 }
 0x2ed   : > { %1103 = vadd.xlane.f32.xlu0 %v1102_v53  ;;  %v1233_v53 = vunpack.c.h.bf16 %v1699_v6 }
 0x2f6   : > { %v716_v54 = vpop.xlane.xlu1 %715 }
 0x2f7   : > { %1558 = vrcp.f32 %v716_v54 }
 0x2f8   : > { %v719_v55 = vpop.xlane.xlu0 %718 }
 0x2f9   : > { %1560 = vrcp.f32 %v719_v55 }
 0x2fa   : > { %v851_v61 = vpop.permute.xlu1 %850 }
 0x2fc   : > { %1110 = vrot.lane.b32.xlu1 %v1756_v50, %s1590_s27 }
 0x301   : > { %v1559_v56 = vpop.eup %1558 }
 0x302   : > { %v722_v58 = vmul.f32 %v1559_v56, %v1543_v19 }
 0x303   : > { %v1561_v57 = vpop.eup %1560  ;;  %980 = vrot.lane.b32.xlu0 %v1756_v50, %s1588_s25 }
 0x304   : > { %v723_v59 = vmul.f32 %v1561_v57, %v1545_v21 }
 0x306   : > { %v724_v60 = vpack.c.bf16 %v723_v59, %v722_v58 }
 0x308   : > { %1468 = vmatmul.mubr.msk.bf16.vlgmr.msra.gmra.mrb[8].mxu0 %vm701_vm3, %v724_v60 }
 0x309   : > { %1478 = vmatpush3.bf16.msra.mxu0 %v851_v61  ;;  %1479 = vmatprep.mubr.msk.bf16.mxu0 %vm1587_vm0, %v1586_v1 }
 0x30a   : > { %1489 = vmatprep.subr.bf16.mxu0 %v1586_v1 }
 0x368   : > { %v840_v62 = vpop.xlane.xlu1 %839 }
 0x369   : > { %1562 = vrcp.f32 %v840_v62 }
 0x36c   : > { %v843_v63 = vpop.xlane.xlu0 %842 }
 0x36d   : > { %1564 = vrcp.f32 %v843_v63 }
 0x370   : > { %v971_v0 = vpop.xlane.xlu1 %970 }
 0x371   : > { %1566 = vrcp.f32 %v971_v0 }
 0x372   : > { %v974_v2 = vpop.xlane.xlu0 %973 }
 0x373   : > { %1568 = vrcp.f32 %v974_v2  ;;  %v1563_v50 = vpop.eup %1562 }
 0x374   : > { %v846_v4 = vmul.f32 %v1563_v50, %v1547_v35 }
 0x377   : > { %v1565_v3 = vpop.eup %1564 }
 0x378   : > { %v847_v5 = vmul.f32 %v1565_v3, %v1549_v40  ;;  %v1101_v7 = vpop.xlane.xlu1 %1100 }
 0x379   : > { %1570 = vrcp.f32 %v1101_v7 }
 0x37a   : > { %v1104_v8 = vpop.xlane.xlu0 %1103  ;;  %v848_v9 = vpack.c.bf16 %v847_v5, %v846_v4 }
 0x37b   : > { %1572 = vrcp.f32 %v1104_v8  ;;  %v1567_v10 = vpop.eup %1566 }
 0x37c   : > { %1480 = vmatmul.mubr.msk.bf16.vlgmr.msra.gmra.mrb[12].mxu0 %vm701_vm3, %v848_v9  ;;  %v977_v14 = vmul.f32 %v1567_v10, %v1551_v45  ;;  %v1111_v17 = vpop.permute.xlu1 %1110 }
 0x37d   : > { %v1569_v11 = vpop.eup %1568  ;;  %1491 = vmatprep.mubr.msk.bf16.mxu0 %vm1587_vm0, %v1586_v1 }
 0x37e   : > { %v978_v12 = vmul.f32 %v1569_v11, %v1553_v47  ;;  %v981_v13 = vpop.permute.xlu0 %980  ;;  %v1392_v47 = vld [vmem:[%s1832_s9] ss:$0 sm:$0xff] }
 0x37f   : > { %1490 = vmatpush3.bf16.msra.mxu0 %v981_v13 }
 0x380   : > { %1501 = vmatprep.subr.bf16.mxu0 %v1586_v1  ;;  %v979_v15 = vpack.c.bf16 %v978_v12, %v977_v14  ;;  %v1396_v14 = vld [vmem:[%s1833_s10] ss:$0 sm:$0xff] }
 0x383   : > { %v1571_v16 = vpop.eup %1570 }
 0x384   : > { %1492 = vmatmul.mubr.msk.bf16.vlgmr.msra.gmra.mrb[16].mxu0 %vm701_vm3, %v979_v15  ;;  %v1107_v20 = vmul.f32 %v1571_v16, %v1555_v49  ;;  %v1397_v16 = vld [vmem:[%s1834_s11] ss:$0 sm:$0xff] }
 0x385   : > { %v1573_v18 = vpop.eup %1572  ;;  %1502 = vmatpush3.bf16.msra.mxu0 %v1111_v17  ;;  %1503 = vmatprep.mubr.msk.bf16.mxu0 %vm1587_vm0, %v1586_v1 }
 0x386   : > { %v1108_v19 = vmul.f32 %v1573_v18, %v1557_v52 }
 0x388   : > { %v1109_v21 = vpack.c.bf16 %v1108_v19, %v1107_v20 }
 0x38c   : > { %1504 = vmatmul.mubr.msk.bf16.vlgmr.msra.gmra.mrb[20].mxu0 %vm701_vm3, %v1109_v21 }
 0x3db   : > { %v762_v22 = vpop.f32.mrb[8].mxu0 }
 0x3dc   : > { %v1469_v23 = vpop.f32.mrb[9].mxu0 }
 0x3dd   : > { %v765_v24 = vpop.f32.mrb[10].mxu0 }
 0x3de   : > { %v769_v25 = vpack.c.bf16 %v765_v24, %v762_v22  ;;  %v1470_v26 = vpop.f32.mrb[11].mxu0 }
 0x3e0   : > { %770 = vst.msk [vmem:[#allocation2] sm:$0xff] %vm651_vm2, %v769_v25 }
 0x44f   : > { %v890_v27 = vpop.f32.mrb[12].mxu0 }
 0x450   : > { %v1481_v28 = vpop.f32.mrb[13].mxu0 }
 0x451   : > { %v893_v29 = vpop.f32.mrb[14].mxu0 }
 0x452   : > { %v897_v30 = vpack.c.bf16 %v893_v29, %v890_v27  ;;  %v1482_v31 = vpop.f32.mrb[15].mxu0 }
 0x454   : > { %899 = vrot.lane.b32.xlu1 %v897_v30, %s1591_s17 }
 0x457   : > { %v1020_v32 = vpop.f32.mrb[16].mxu0 }
 0x458   : > { %v1493_v34 = vpop.f32.mrb[17].mxu0 }
 0x459   : > { %v1023_v35 = vpop.f32.mrb[18].mxu0 }
 0x45a   : > { %v1027_v37 = vpack.c.bf16 %v1023_v35, %v1020_v32  ;;  %v1494_v38 = vpop.f32.mrb[19].mxu0 }
 0x45c   : > { %1029 = vrot.lane.b32.xlu0 %v1027_v37, %s1592_s23 }
 0x45f   : > { %v1150_v39 = vpop.f32.mrb[20].mxu0 }
 0x460   : > { %v1505_v40 = vpop.f32.mrb[21].mxu0 }
 0x461   : > { %v1153_v41 = vpop.f32.mrb[22].mxu0 }
 0x462   : > { %v1157_v42 = vpack.c.bf16 %v1153_v41, %v1150_v39  ;;  %v1506_v43 = vpop.f32.mrb[23].mxu0 }
 0x464   : > { %1159 = vrot.lane.b32.xlu1 %v1157_v42, %s1593_s24 }
 0x4c6   : > { %v900_v44 = vpop.permute.xlu1 %899 }
 0x4c7   : > { %903 = vst.msk [vmem:[#allocation2] sm:$0xff] %vm902_vm4, %v900_v44 }
 0x4ce   : > { %v1030_v45 = vpop.permute.xlu0 %1029 }
 0x4cf   : > { %1033 = vst.msk [vmem:[#allocation2] sm:$0xff] %vm1032_vm5, %v1030_v45 }
 0x4d6   : > { %v1160_v46 = vpop.permute.xlu1 %1159 }
 0x4d7   : > { %1163 = vst.msk [vmem:[#allocation2] sm:$0xff] %vm1162_vm6, %v1160_v46 }
 0x4de   : > { %v1164_v1 = vld [vmem:[#allocation2] sm:$0xff] }
 0x4df   : > { %1512 = vmatmul.mubr.msk.bf16.vlgmr.msra.gmra.mrb[20].mxu1 %vm467_vm1, %v1164_v1 }
 0x5b2   : > { %v1225_v49 = vpop.f32.mrb[20].mxu1 }
 0x5b3   : > { %v1226_v51 = vadd.f32 %v1392_v47, %v1225_v49  ;;  %v1513_v52 = vpop.f32.mrb[21].mxu1 }
 0x5b4   : > { %v1228_v54 = vpop.f32.mrb[22].mxu1 }
 0x5b5   : > { %v1229_v55 = vadd.f32 %v1392_v47, %v1228_v54  ;;  %v1514_v56 = vpop.f32.mrb[23].mxu1  ;;  %v1234_v57 = vadd.f32 %v1232_v48, %v1226_v51 }
 0x5b7   : > { %v1238_v58 = vsel %vm467_vm1, %v1234_v57, 0.0  ;;  %v1235_v59 = vadd.f32 %v1233_v53, %v1229_v55 }
 0x5b8   : > { %1239 = vadd.xlane.f32.xlu0 %v1238_v58 }
 0x5b9   : > { %v1241_v60 = vsel %vm467_vm1, %v1235_v59, 0.0 }
 0x5ba   : > { %1242 = vadd.xlane.f32.xlu1 %v1241_v60 }
 0x645   : > { %v1240_v61 = vpop.xlane.xlu0 %1239 }
 0x646   : > { %v1245_v62 = vmul.f32 0.03125, %v1240_v61 }
 0x647   : > { %v1243_v63 = vpop.xlane.xlu1 %1242 }
 0x648   : > { %v1247_v0 = vsub.f32 %v1234_v57, %v1245_v62  ;;  %v1246_v2 = vmul.f32 0.03125, %v1243_v63 }
 0x64a   : > { %v1248_v50 = vsub.f32 %v1235_v59, %v1246_v2  ;;  %v1249_v3 = vmul.f32 %v1247_v0, %v1247_v0 }
 0x64c   : > { %v1251_v6 = vsel %vm467_vm1, %v1249_v3, 0.0  ;;  %v1250_v4 = vmul.f32 %v1248_v50, %v1248_v50 }
 0x64d   : > { %1252 = vadd.xlane.f32.xlu0 %v1251_v6 }
 0x64e   : > { %v1254_v5 = vsel %vm467_vm1, %v1250_v4, 0.0 }
 0x651   : > { %1255 = vadd.xlane.f32.xlu0 %v1254_v5 }
 0x6da   : > { %v1253_v7 = vpop.xlane.xlu0 %1252 }
 0x6db   : > { %v1257_v8 = vmul.f32 0.03125, %v1253_v7 }
 0x6dd   : > { %v1259_v9 = vadd.f32 1e-05, %v1257_v8 }
 0x6de   : > { %v1256_v10 = vpop.xlane.xlu0 %1255 }
 0x6df   : > { %1574 = vrsqrt.f32 %v1259_v9  ;;  %v1258_v11 = vmul.f32 0.03125, %v1256_v10 }
 0x6e1   : > { %v1260_v12 = vadd.f32 1e-05, %v1258_v11 }
 0x6e3   : > { %1576 = vrsqrt.f32 %v1260_v12 }
 0x6e9   : > { %v1575_v13 = vpop.eup %1574 }
 0x6ea   : > { %v1263_v15 = vmul.f32 %v1575_v13, %v1247_v0 }
 0x6ec   : > { %v1271_v17 = vmul.f32 %v1396_v14, %v1263_v15 }
 0x6ed   : > { %v1577_v18 = vpop.eup %1576 }
 0x6ee   : > { %v1279_v19 = vadd.f32 %v1397_v16, %v1271_v17  ;;  %v1264_v20 = vmul.f32 %v1577_v18, %v1248_v50 }
 0x6f0   : > { %v1405_v21 = vpack.c.bf16 %v1279_v19, %v1279_v19  ;;  %v1272_v22 = vmul.f32 %v1396_v14, %v1264_v20 }
 0x6f2   : > { %1290 = vst.msk [vmem:[%s433_s16] sm:$0xf] %vm1289_vm7, %v1405_v21  ;;  %v1280_v23 = vadd.f32 %v1397_v16, %v1272_v22 }
 0x6f4   : > { %v1406_v24 = vpack.c.bf16 %v1280_v23, %v1280_v23 }
 0x6f6   : > { %1291 = vst.msk [vmem:[%s433_s16 + $0x4] sm:$0xf] %vm1289_vm7, %v1406_v24 }
 0x6f7 PF: > { %s22_s21 = sadd.s32 1, %s1584_s21  }
 0x6f8   : > { %p19_p4 = scmp.ge.s32.totalorder %s22_s21, 4  }
 0x6fa   :  { %21 = sbr.rel (!%p19_p4) target bundleno = 1 (0x1), region = 101 }

// kernel: perceiver_image_encoder_forward.15
= control target key start
LH: loop header
LB: loop body
LE: loop exit
PB: predicated region body
PF: predicated region fallthrough
CT: control target
= control target key end

     0   :  { %8 = vsyncpa [#allocation3], 0  ;;  %s565_s0 = inlined_call_operand.vmem [shape: bf16[32,32], index: 0, kind: input, shape index: {}]   ;;  %s566_s1 = inlined_call_operand.vmem [shape: f32[1,32], index: 1, kind: input, shape index: {}]   ;;  %s567_s2 = inlined_call_operand.vmem [shape: f32[1,32], index: 2, kind: input, shape index: {}]   ;;  %s568_s3 = inlined_call_operand.hbm [shape: f32[32,32], index: 3, kind: output, shape index: {}]  }
   0x1   :  { %10 = vsyncpa [#allocation3 + $0x1], 0  ;;  %s451_s12 = smov 0   ;;  %s453_s13 = smov 0  }
   0x2   :  { %s455_s14 = smov 0   ;;  %s457_s15 = smov 0  }
   0x3 LB: > { %s472_s16 = sadd.s32 4294967295, %s426_s15   ;;  %s300_s17 = sadd.s32 4294967294, %s426_s15   ;;  %s426_s15 = sphi %s457_s15, %s574_s15   ;;  %s422_s14 = sphi %s455_s14, %s573_s14   ;;  %s418_s13 = sphi %s453_s13, %s572_s13   ;;  %s414_s12 = sphi %s451_s12, %s571_s12  }
   0x4   : > { %s476_s18 = sadd.s32 1, %s426_s15   ;;  %s91_s19 = sadd.s32 1, %s422_s14 }
   0x5   : > { %s88_s20 = ssub.s32 %s426_s15, %s476_s18  ;;  %p101_p0 = scmp.ne.s32.totalorder %s422_s14, %s418_s13 }
   0x6   : > { %p89_p1 = scmp.eq.s32.totalorder %s88_s20, 0  ;;  %p102_p2 = scmp.eq.s32.totalorder %s472_s16, 1 }
   0x7   : > { %p107_p3 = scmp.ne.s32.totalorder %s418_s13, %s414_s12  ;;  %p108_p4 = scmp.eq.s32.totalorder %s300_s17, 1 }
   0x8   : > { %s487_s21 = scalar_select %p89_p1, %s422_s14, %s91_s19  }
   0x9   : > { %p489_p5 = por %p102_p2, %p101_p0  ;;  %p493_p6 = por %p108_p4, %p107_p3 }
   0xa   : > { %p303_p7 = scmp.ge.s32.totalorder %s426_s15, 1  ;;  %p141_p8 = scmp.lt.s32.totalorder %s426_s15, 3 }
   0xc   : > { %p142_p9 = pnand %p303_p7, %p141_p8 }
   0xd   : > { %s305_s24 = sshll.u32 (!%p142_p9), %s472_s16, 1  ;;  %vm178_vm0 = vcmask (!%p142_p9), 261120   ;;  %s162_s29 = sand.u32 (!%p142_p9), 1, %s418_s13   ;;  %v307_v22 = vld [vmem:[%s566_s1] ss:$0 sm:$0xff] (!%p142_p9) }
   0xe   : > { %145 = sbr.rel (%p142_p9) target bundleno = 359 (0x167), region = 32  ;;  %p166_p10 = scmp.lt.s32.totalorder (!%p142_p9), %s305_s24, 3  ;;  %v308_v24 = vld [vmem:[%s567_s2] ss:$0 sm:$0xff] (!%p142_p9) }
   0xf   : > { %s304_s5 = sshll.u32 (!%p142_p9), %s162_s29, 4  ;;  %s314_s8 = sshll.u32 (!%p142_p9), %s472_s16, 8 }
  0x10   : > { %s164_s9 = scalar_lea.vmem (!%p142_p9), [#allocation2], %s304_s5  ;;  %s519_s19 = scalar_lea.hbm (!%p142_p9), %s568_s3, %s314_s8 }
  0x11   : > { %s238_s10 = sshll.u32 (!%p142_p9), %s164_s9, 4  ;;  %s524_s20 = scalar_lea.sflag (!%p142_p9), [#allocation3], %s162_s29  ;;  %s521_s10 = int_to_ptr.vmem [resolvable:$true] %s238_s10 }
  0x12   : > { %s364_s16 = scalar_lea.vmem (!%p142_p9), %s521_s10, 256 }
  0x13   : > { %p365_p11 = scmp.ne.s32.totalorder (!%p142_p9), %s521_s10, %s364_s16 }
  0x15   : > { %s576_s24 = smov (!%p166_p10, %s305_s24), 3  ;;  %p366_p12 = pnand %p365_p11, %p489_p5 }
  0x16   : > { %s306_s25 = sshll.u32 %s576_s24, 2  ;;  %s428_s24 = smov [#allocation2]  }
  0x17   : > { %s169_s28 = scalar_lea.vmem %s565_s0, %s306_s25  ;;  %p367_p13 = pneg %p366_p12 }
  0x18   : > { %v316_v0 = vld [vmem:[%s169_s28] sm:$0xff]   ;;  %s368_s25 = sshll.u32 %s428_s24, 4  ;;  %s369_s25 = int_to_ptr.vmem [resolvable:$false] %s368_s25 }
  0x19   : > { %v317_v1 = vunpack.c.l.bf16 %v316_v0  ;;  %v318_v2 = vunpack.c.h.bf16 %v316_v0  ;;  %s370_s26 = scalar_lea.vmem %s369_s25, 512  ;;  %p371_p0 = scmp.lt.s32.totalorder %s521_s10, %s369_s25 }
  0x1a   : > { %p372_p1 = scmp.lt.s32.totalorder %s370_s26, %s364_s16 }
  0x1b   : > { %v179_v3 = vsel %vm178_vm0, %v317_v1, 0.0  ;;  %v182_v4 = vsel %vm178_vm0, %v318_v2, 0.0 }
  0x1c   : > { %180 = vadd.xlane.f32.xlu0 %v179_v3  ;;  %p373_p2 = por %p372_p1, %p371_p0 }
  0x1e   : > { %p374_p3 = pnand %p373_p2, %p367_p13 }
  0x20   : > { %183 = vadd.xlane.f32.xlu0 %v182_v4 }
  0xa9   : > { %v181_v5 = vpop.xlane.xlu0 %180 }
  0xaa   : > { %v186_v6 = vmul.f32 0.03125, %v181_v5 }
  0xac   : > { %v188_v7 = vsub.f32 %v317_v1, %v186_v6 }
  0xad   : > { %v184_v8 = vpop.xlane.xlu0 %183 }
  0xae   : > { %v187_v9 = vmul.f32 0.03125, %v184_v8  ;;  %v190_v10 = vmul.f32 %v188_v7, %v188_v7 }
  0xb0   : > { %v189_v11 = vsub.f32 %v318_v2, %v187_v9  ;;  %v192_v12 = vsel %vm178_vm0, %v190_v10, 0.0 }
  0xb1   : > { %193 = vadd.xlane.f32.xlu1 %v192_v12 }
  0xb2   : > { %v191_v13 = vmul.f32 %v189_v11, %v189_v11 }
  0xb4   : > { %v195_v14 = vsel %vm178_vm0, %v191_v13, 0.0 }
  0xb5   : > { %196 = vadd.xlane.f32.xlu1 %v195_v14 }
 0x13e   : > { %v194_v15 = vpop.xlane.xlu1 %193 }
 0x13f   : > { %v198_v16 = vmul.f32 0.03125, %v194_v15 }
 0x141   : > { %v200_v17 = vadd.f32 1e-05, %v198_v16 }
 0x142   : > { %v197_v18 = vpop.xlane.xlu1 %196 }
 0x143   : > { %360 = vrsqrt.f32 %v200_v17  ;;  %v199_v19 = vmul.f32 0.03125, %v197_v18 }
 0x145   : > { %v201_v20 = vadd.f32 1e-05, %v199_v19 }
 0x147   : > { %362 = vrsqrt.f32 %v201_v20 }
 0x14d   : > { %v361_v21 = vpop.eup %360 }
 0x14e   : > { %v204_v23 = vmul.f32 %v361_v21, %v188_v7 }
 0x150   : > { %v212_v25 = vmul.f32 %v307_v22, %v204_v23 }
 0x151   : > { %v363_v26 = vpop.eup %362 }
 0x152   : > { %v205_v27 = vmul.f32 %v363_v26, %v189_v11  ;;  %v220_v28 = vadd.f32 %v308_v24, %v212_v25 }
 0x154   : > { %v213_v29 = vmul.f32 %v307_v22, %v205_v27  ;;  %222 = vst.msk [vmem:[%s164_s9] sm:$0xff] %vm178_vm0, %v220_v28 }
 0x156   : > { %v221_v30 = vadd.f32 %v308_v24, %v213_v29 }
 0x158   : > { %223 = vst.msk [vmem:[%s164_s9 + $0x8] sm:$0xff] %vm178_vm0, %v221_v30 }
 0x159   : > { %377 = shalt.err (!%p374_p3)
}
 0x15a   : > { %s378_s27 = scalar_lea.hbm %s519_s19, 256  ;;  %s382_s30 = scalar_lea.hbm %s568_s3, 512 }
 0x15b   : > { %p379_p4 = scmp.ne.s32.totalorder %s519_s19, %s378_s27  ;;  %p383_p9 = scmp.lt.u32.totalorder %s519_s19, %s568_s3 }
 0x15c   : > { %p384_p10 = scmp.lt.u32.totalorder %s382_s30, %s378_s27  ;;  %p386_p12 = scmp.lt.u32.totalorder %s378_s27, %s519_s19 }
 0x15d   : > { %p380_p7 = pnand %p379_p4, %p489_p5 }
 0x15e   : > { %p385_p11 = por %p384_p10, %p383_p9 }
 0x15f   : > { %p381_p8 = pneg %p380_p7 }
 0x160   : > { %p387_p13 = por %p386_p12, %p385_p11 }
 0x162   : > { %p388_p0 = pnand %p387_p13, %p381_p8 }
 0x164   : > { %391 = shalt.err (!%p388_p0)
}
 0x165   : > { %s429_s6 = smov 128   ;;  %s430_s7 = smov 8  }
 0x166   : > { %319 = dma.vmem_to_hbm [thread:$0]  (%p489_p5), %s521_s10, 256, %s519_s19, %s524_s20, %s429_s6, %s429_s6, %s430_s7  }
 0x167 PF: > { %p325_p1 = scmp.ge.s32.totalorder %s426_s15, 2  ;;  %s253_s8 = sand.u32 1, %s414_s12  }
 0x168   : > { %s254_s9 = scalar_lea.sflag [#allocation3], %s253_s8 }
 0x169   : > { %p322_p2 = pnand %p325_p1, %p493_p6 }
 0x16b   : > { %409 = dma.done.wait (!%p322_p2), %s254_s9, 256  }
 0x16c   : > { %411 = vsyncadd (!%p322_p2), %s254_s9, 4294967040  ;;  %p13_p3 = scmp.ge.s32.totalorder %s476_s18, 4   ;;  %s571_s12 = smov %s418_s13 }
 0x16d   : > { %s572_s13 = smov %s422_s14  ;;  %s573_s14 = smov %s487_s21 }
 0x16e   : > { %s574_s15 = smov %s476_s18  ;;  %15 = sbr.rel (!%p13_p3) target bundleno = 3 (0x3), region = 67 }
 0x175   :  { %259 = vsyncpa [#allocation3], 1 }
 0x176   :  { %261 = vsyncpa [#allocation3 + $0x1], 1 }

// kernel: perceiver_image_encoder_forward.11
= control target key start
LH: loop header
LB: loop body
LE: loop exit
PB: predicated region body
PF: predicated region fallthrough
CT: control target
= control target key end

     0   :  { %s2993_s24 = smov 0   ;;  %s3628_s0 = inlined_call_operand.vmem [shape: bf16[32,32], index: 0, kind: input, shape index: {}]   ;;  %s3629_s1 = inlined_call_operand.vmem [shape: bf16[32,2048], index: 1, kind: input, shape index: {}]   ;;  %s3630_s2 = inlined_call_operand.vmem [shape: f32[1,2048], index: 2, kind: input, shape index: {}]   ;;  %s3631_s3 = inlined_call_operand.vmem [shape: bf16[2048,32], index: 3, kind: input, shape index: {}]   ;;  %s3632_s4 = inlined_call_operand.vmem [shape: f32[1,32], index: 4, kind: input, shape index: {}]   ;;  %s3633_s5 = inlined_call_operand.vmem [shape: f32[1,32], index: 5, kind: input, shape index: {}]   ;;  %s3634_s6 = inlined_call_operand.vmem [shape: f32[1,32], index: 6, kind: input, shape index: {}]   ;;  %s3635_s7 = inlined_call_operand.vmem [shape: bf16[32,32], index: 7, kind: output, shape index: {}]  }
   0x1 LB: > { %s2437_s25 = sadd.s32 4294967295, %s2950_s24   ;;  %p2441_p0 = scmp.ge.s32.totalorder %s2950_s24, 1  ;;  %s2950_s24 = sphi %s2993_s24, %s17_s24  }
   0x2   : > { %p238_p1 = scmp.lt.s32.totalorder %s2950_s24, 3 }
   0x4   : > { %p239_p2 = pnand %p2441_p0, %p238_p1 }
   0x5   : > { %v285_v0 = vld [vmem:[%s3629_s1] sm:$0xff] (!%p239_p2)  ;;  %v286_v2 = vld [vmem:[%s3629_s1 + $0x8] sm:$0xff] (!%p239_p2)  ;;  %s2442_s9 = sshll.u32 (!%p239_p2), %s2437_s25, 1  ;;  %v2952_v8 = vmov (!%p239_p2), 0   ;;  %v287_v14 = vld [vmem:[%s3629_s1 + $0x10] sm:$0xff] (!%p239_p2)  ;;  %vm566_vm0 = vcmask (!%p239_p2), 261120  }
   0x6   : > { %242 = sbr.rel (%p239_p2) target bundleno = 876 (0x36c), region = 48  ;;  %v293_v1 = vld [vmem:[%s3629_s1 + $0x40] sm:$0xff] (!%p239_p2)  ;;  %v294_v4 = vld [vmem:[%s3629_s1 + $0x48] sm:$0xff] (!%p239_p2)  ;;  %602 = vmatprep.mubr.bf16.mxu0 (!%p239_p2), %v2952_v8  ;;  %645 = vmatprep.mubr.bf16.mxu1 (!%p239_p2), %v2952_v8  ;;  %p271_p3 = scmp.lt.s32.totalorder (!%p239_p2), %s2442_s9, 3  ;;  %v295_v16 = vld [vmem:[%s3629_s1 + $0x50] sm:$0xff] (!%p239_p2)  ;;  %vm2378_vm1 = vcmask (!%p239_p2), 257024  }
   0x7   : > { %v2448_v3 = vcombine.high (!%p239_p2), %v285_v0, %v293_v1  ;;  %v2447_v5 = vcombine.low (!%p239_p2), %v285_v0, %v293_v1  ;;  %v301_v6 = vld [vmem:[%s3629_s1 + $0x80] sm:$0xff] (!%p239_p2)  ;;  %v2450_v9 = vcombine.high (!%p239_p2), %v286_v2, %v294_v4  ;;  %v2449_v10 = vcombine.low (!%p239_p2), %v286_v2, %v294_v4  ;;  %v302_v12 = vld [vmem:[%s3629_s1 + $0x88] sm:$0xff] (!%p239_p2)  ;;  %v288_v17 = vld [vmem:[%s3629_s1 + $0x18] sm:$0xff] (!%p239_p2) }
   0x8   : > { %v309_v7 = vld [vmem:[%s3629_s1 + $0xc0] sm:$0xff] (!%p239_p2)  ;;  %v310_v13 = vld [vmem:[%s3629_s1 + $0xc8] sm:$0xff] (!%p239_p2)  ;;  %v296_v18 = vld [vmem:[%s3629_s1 + $0x58] sm:$0xff] (!%p239_p2)  ;;  %v2452_v21 = vcombine.high (!%p239_p2), %v287_v14, %v295_v16  ;;  %v2451_v28 = vcombine.low (!%p239_p2), %v287_v14, %v295_v16 }
   0x9   : > { %v2464_v11 = vcombine.high (!%p239_p2), %v301_v6, %v309_v7  ;;  %570 = vmatprep.subr.bf16.mxu0 (!%p239_p2), %v2448_v3  ;;  %v2466_v15 = vcombine.high (!%p239_p2), %v302_v12, %v310_v13  ;;  %613 = vmatprep.subr.bf16.mxu1 (!%p239_p2), %v2450_v9  ;;  %v2463_v19 = vcombine.low (!%p239_p2), %v301_v6, %v309_v7  ;;  %v303_v23 = vld [vmem:[%s3629_s1 + $0x90] sm:$0xff] (!%p239_p2)  ;;  %v304_v26 = vld [vmem:[%s3629_s1 + $0x98] sm:$0xff] (!%p239_p2)  ;;  %v289_v32 = vld [vmem:[%s3629_s1 + $0x20] sm:$0xff] (!%p239_p2) }
   0xa   : > { %571 = vmatpush1.bf16.msra.mxu0 (!%p239_p2), %v2447_v5  ;;  %614 = vmatpush1.bf16.msra.mxu1 (!%p239_p2), %v2449_v10  ;;  %v2465_v20 = vcombine.low (!%p239_p2), %v302_v12, %v310_v13  ;;  %v2454_v22 = vcombine.high (!%p239_p2), %v288_v17, %v296_v18  ;;  %v311_v24 = vld [vmem:[%s3629_s1 + $0xd0] sm:$0xff] (!%p239_p2)  ;;  %v312_v27 = vld [vmem:[%s3629_s1 + $0xd8] sm:$0xff] (!%p239_p2)  ;;  %v2453_v29 = vcombine.low (!%p239_p2), %v288_v17, %v296_v18  ;;  %v297_v33 = vld [vmem:[%s3629_s1 + $0x60] sm:$0xff] (!%p239_p2) }
   0xb   : > { %572 = vmatprep.subr.bf16.mxu0 (!%p239_p2), %v2464_v11  ;;  %615 = vmatprep.subr.bf16.mxu1 (!%p239_p2), %v2466_v15  ;;  %v2468_v30 = vcombine.high (!%p239_p2), %v303_v23, %v311_v24  ;;  %v2470_v31 = vcombine.high (!%p239_p2), %v304_v26, %v312_v27  ;;  %v290_v34 = vld [vmem:[%s3629_s1 + $0x28] sm:$0xff] (!%p239_p2)  ;;  %v2467_v36 = vcombine.low (!%p239_p2), %v303_v23, %v311_v24  ;;  %v305_v37 = vld [vmem:[%s3629_s1 + $0xa0] sm:$0xff] (!%p239_p2)  ;;  %v291_v45 = vld [vmem:[%s3629_s1 + $0x30] sm:$0xff] (!%p239_p2) }
   0xc   : > { %v298_v35 = vld [vmem:[%s3629_s1 + $0x68] sm:$0xff] (!%p239_p2)  ;;  %v2469_v38 = vcombine.low (!%p239_p2), %v304_v26, %v312_v27  ;;  %v2456_v39 = vcombine.high (!%p239_p2), %v289_v32, %v297_v33  ;;  %v313_v40 = vld [vmem:[%s3629_s1 + $0xe0] sm:$0xff] (!%p239_p2)  ;;  %v2455_v44 = vcombine.low (!%p239_p2), %v289_v32, %v297_v33  ;;  %v299_v48 = vld [vmem:[%s3629_s1 + $0x70] sm:$0xff] (!%p239_p2) }
   0xd   : > { %s3637_s9 = smov (!%p271_p3, %s2442_s9), 3  ;;  %v2458_v41 = vcombine.high %v290_v34, %v298_v35  ;;  %v306_v42 = vld [vmem:[%s3629_s1 + $0xa8] sm:$0xff]  ;;  %v2457_v46 = vcombine.low %v290_v34, %v298_v35  ;;  %v2472_v47 = vcombine.high %v305_v37, %v313_v40  ;;  %v292_v50 = vld [vmem:[%s3629_s1 + $0x38] sm:$0xff]  ;;  %v2471_v52 = vcombine.low %v305_v37, %v313_v40  ;;  %v307_v53 = vld [vmem:[%s3629_s1 + $0xb0] sm:$0xff] }
   0xe   : > { %s2443_s29 = sshll.u32 %s3637_s9, 2  ;;  %573 = vmatpush1.bf16.msra.mxu0 %v2463_v19  ;;  %616 = vmatpush1.bf16.msra.mxu1 %v2465_v20  ;;  %v314_v43 = vld [vmem:[%s3629_s1 + $0xe8] sm:$0xff]  ;;  %v300_v51 = vld [vmem:[%s3629_s1 + $0x78] sm:$0xff]  ;;  %v2460_v55 = vcombine.high %v291_v45, %v299_v48  ;;  %v315_v56 = vld [vmem:[%s3629_s1 + $0xf0] sm:$0xff]  ;;  %v2459_v60 = vcombine.low %v291_v45, %v299_v48 }
   0xf   : > { %s3047_s10 = scalar_lea.vmem %s3628_s0, %s2443_s29  ;;  %656 = vmatprep.subr.bf16.mxu0 %v2452_v21  ;;  %699 = vmatprep.subr.bf16.mxu1 %v2454_v22  ;;  %v2474_v49 = vcombine.high %v306_v42, %v314_v43  ;;  %v2473_v54 = vcombine.low %v306_v42, %v314_v43  ;;  %v2462_v57 = vcombine.high %v292_v50, %v300_v51  ;;  %v308_v58 = vld [vmem:[%s3629_s1 + $0xb8] sm:$0xff]  ;;  %v2810_v1 = vld [vmem:[%s3631_s3 + $0x40] sm:$0xff]   ;;  %v2814_v6 = vld [vmem:[%s3631_s3 + $0x48] sm:$0xff]   ;;  %s280_s14 = scalar_lea.vmem %s3635_s7, %s2443_s29 }
  0x10   : > { %v3056_v25 = vld [vmem:[%s3047_s10] sm:$0xff]   ;;  %v316_v59 = vld [vmem:[%s3629_s1 + $0xf8] sm:$0xff]  ;;  %v2461_v61 = vcombine.low %v292_v50, %v300_v51  ;;  %v2476_v62 = vcombine.high %v307_v53, %v315_v56  ;;  %v2475_v0 = vcombine.low %v307_v53, %v315_v56  ;;  %v2815_v7 = vld [vmem:[%s3631_s3 + $0xc8] sm:$0xff]  }
  0x11   : > { %2479 = vmatmul.mubr.msk.bf16.vlgmr.msra.gmra.mrb[0].mxu0 %vm566_vm0, %v3056_v25  ;;  %2480 = vmatmul.mubr.msk.bf16.vlgmr.msra.gmra.mrb[0].mxu1 %vm566_vm0, %v3056_v25  ;;  %v2478_v63 = vcombine.high %v308_v58, %v316_v59  ;;  %v2477_v2 = vcombine.low %v308_v58, %v316_v59  ;;  %v2811_v3 = vld [vmem:[%s3631_s3 + $0xc0] sm:$0xff]   ;;  %v2817_v9 = vld [vmem:[%s3631_s3 + $0x88] sm:$0xff]   ;;  %v2818_v10 = vld [vmem:[%s3631_s3 + $0x50] sm:$0xff]  }
  0x12   : > { %657 = vmatpush1.bf16.msra.mxu0 %v2451_v28  ;;  %700 = vmatpush1.bf16.msra.mxu1 %v2453_v29  ;;  %v2812_v4 = vld [vmem:[%s3631_s3] sm:$0xff]   ;;  %v2819_v11 = vld [vmem:[%s3631_s3 + $0xd0] sm:$0xff]   ;;  %v2822_v14 = vld [vmem:[%s3631_s3 + $0x58] sm:$0xff]  }
  0x13   : > { %658 = vmatprep.subr.bf16.mxu0 %v2468_v30  ;;  %701 = vmatprep.subr.bf16.mxu1 %v2470_v31  ;;  %v2813_v5 = vld [vmem:[%s3631_s3 + $0x80] sm:$0xff]   ;;  %v2820_v12 = vld [vmem:[%s3631_s3 + $0x10] sm:$0xff]   ;;  %v2823_v15 = vld [vmem:[%s3631_s3 + $0xd8] sm:$0xff]  }
  0x14   : > { %688 = vmatprep.mubr.bf16.mxu0 %v2952_v8  ;;  %731 = vmatprep.mubr.bf16.mxu1 %v2952_v8  ;;  %v2821_v13 = vld [vmem:[%s3631_s3 + $0x90] sm:$0xff]   ;;  %v2824_v16 = vld [vmem:[%s3631_s3 + $0x18] sm:$0xff]   ;;  %v2826_v18 = vld [vmem:[%s3631_s3 + $0x60] sm:$0xff]  }
  0x15   : > { %v2825_v17 = vld [vmem:[%s3631_s3 + $0x98] sm:$0xff]   ;;  %v2827_v19 = vld [vmem:[%s3631_s3 + $0xe0] sm:$0xff]   ;;  %v2830_v22 = vld [vmem:[%s3631_s3 + $0x68] sm:$0xff]  }
  0x16   : > { %659 = vmatpush1.bf16.msra.mxu0 %v2467_v36  ;;  %702 = vmatpush1.bf16.msra.mxu1 %v2469_v38  ;;  %v2828_v20 = vld [vmem:[%s3631_s3 + $0x20] sm:$0xff]   ;;  %v2831_v23 = vld [vmem:[%s3631_s3 + $0xe8] sm:$0xff]   ;;  %v2834_v26 = vld [vmem:[%s3631_s3 + $0x70] sm:$0xff]   ;;  %v321_v36 = vlaneseq }
  0x17   : > { %742 = vmatprep.subr.bf16.mxu0 %v2456_v39  ;;  %785 = vmatprep.subr.bf16.mxu1 %v2458_v41  ;;  %v2829_v21 = vld [vmem:[%s3631_s3 + $0xa0] sm:$0xff]   ;;  %v2832_v24 = vld [vmem:[%s3631_s3 + $0x28] sm:$0xff]   ;;  %v2835_v27 = vld [vmem:[%s3631_s3 + $0xf0] sm:$0xff]  }
  0x18   : > { %v2836_v28 = vld [vmem:[%s3631_s3 + $0x30] sm:$0xff]   ;;  %v2838_v30 = vld [vmem:[%s3631_s3 + $0x78] sm:$0xff]   ;;  %v2842_v34 = vld [vmem:[%s3631_s3 + $0x140] sm:$0xff]   ;;  %v3236_v37 = vshrl.u32 %v321_v36, 7 }
  0x19   : > { %2481 = vmatmul.mubr.msk.bf16.vlgmr.msra.gmra.mrb[4].mxu0 %vm566_vm0, %v3056_v25  ;;  %2482 = vmatmul.mubr.msk.bf16.vlgmr.msra.gmra.mrb[4].mxu1 %vm566_vm0, %v3056_v25  ;;  %v2837_v29 = vld [vmem:[%s3631_s3 + $0xb0] sm:$0xff]   ;;  %v2839_v31 = vld [vmem:[%s3631_s3 + $0xf8] sm:$0xff]   ;;  %v2843_v35 = vld [vmem:[%s3631_s3 + $0x1c0] sm:$0xff]  }
  0x1a   : > { %743 = vmatpush1.bf16.msra.mxu0 %v2455_v44  ;;  %786 = vmatpush1.bf16.msra.mxu1 %v2457_v46  ;;  %v2840_v32 = vld [vmem:[%s3631_s3 + $0x38] sm:$0xff]   ;;  %v323_v38 = vsub.s32 0, %v3236_v37  ;;  %v317_v39 = vld [vmem:[%s3630_s2] sm:$0xff]  ;;  %v331_v40 = vsub.s32 2, %v3236_v37  ;;  %v327_v41 = vsub.s32 1, %v3236_v37  ;;  %v335_v42 = vsub.s32 3, %v3236_v37 }
  0x1b   : > { %744 = vmatprep.subr.bf16.mxu0 %v2472_v47  ;;  %787 = vmatprep.subr.bf16.mxu1 %v2474_v49  ;;  %v2841_v33 = vld [vmem:[%s3631_s3 + $0xb8] sm:$0xff]   ;;  %v339_v47 = vsub.s32 4, %v3236_v37  ;;  %v343_v49 = vsub.s32 5, %v3236_v37 }
  0x1c   : > { %774 = vmatprep.mubr.bf16.mxu0 %v2952_v8  ;;  %817 = vmatprep.mubr.bf16.mxu1 %v2952_v8  ;;  %v324_v43 = vrot.slane %v317_v39, %v323_v38  ;;  %v332_v44 = vrot.slane %v317_v39, %v331_v40  ;;  %v328_v45 = vrot.slane %v317_v39, %v327_v41 }
  0x1d   : > { %v336_v46 = vrot.slane %v317_v39, %v335_v42 }
  0x1e   : > { %745 = vmatpush1.bf16.msra.mxu0 %v2471_v52  ;;  %788 = vmatpush1.bf16.msra.mxu1 %v2473_v54 }
  0x1f   : > { %828 = vmatprep.subr.bf16.mxu0 %v2460_v55  ;;  %871 = vmatprep.subr.bf16.mxu1 %v2462_v57  ;;  %v347_v57 = vsub.s32 6, %v3236_v37 }
  0x21   : > { %2483 = vmatmul.mubr.msk.bf16.vlgmr.msra.gmra.mrb[8].mxu0 %vm566_vm0, %v3056_v25  ;;  %2484 = vmatmul.mubr.msk.bf16.vlgmr.msra.gmra.mrb[8].mxu1 %vm566_vm0, %v3056_v25 }
  0x22   : > { %829 = vmatpush1.bf16.msra.mxu0 %v2459_v60  ;;  %872 = vmatpush1.bf16.msra.mxu1 %v2461_v61 }
  0x23   : > { %830 = vmatprep.subr.bf16.mxu0 %v2476_v62  ;;  %873 = vmatprep.subr.bf16.mxu1 %v2478_v63  ;;  %v340_v62 = vrot.slane %v317_v39, %v339_v47  ;;  %v351_v63 = vsub.s32 7, %v3236_v37  ;;  %v2862_v37 = vld [vmem:[%s3631_s3 + $0x168] sm:$0xff]  }
  0x24   : > { %860 = vmatprep.mubr.bf16.mxu0 %v2952_v8  ;;  %903 = vmatprep.mubr.bf16.mxu1 %v2952_v8  ;;  %v2816_v8 = vld [vmem:[%s3631_s3 + $0x8] sm:$0xff]  }
  0x26   : > { %831 = vmatpush1.bf16.msra.mxu0 %v2475_v0  ;;  %874 = vmatpush1.bf16.msra.mxu1 %v2477_v2 }
  0x27   : > { %2624 = vmatprep.subr.bf16.mxu0 %v2810_v1  ;;  %2646 = vmatprep.subr.bf16.mxu1 %v2811_v3 }
  0x29   : > { %2485 = vmatmul.mubr.msk.bf16.vlgmr.msra.gmra.mrb[12].mxu0 %vm566_vm0, %v3056_v25  ;;  %2486 = vmatmul.mubr.msk.bf16.vlgmr.msra.gmra.mrb[12].mxu1 %vm566_vm0, %v3056_v25  ;;  %v2833_v25 = vld [vmem:[%s3631_s3 + $0xa8] sm:$0xff]  }
  0x2a   : > { %2625 = vmatpush3.bf16.msra.mxu0 %v2812_v4  ;;  %2647 = vmatpush3.bf16.msra.mxu1 %v2813_v5  ;;  %v344_v4 = vrot.slane %v317_v39, %v343_v49 }
  0x2b   : > { %2626 = vmatprep.subr.bf16.mxu0 %v2814_v6  ;;  %2648 = vmatprep.subr.bf16.mxu1 %v2815_v7 }
  0x2e   : > { %2627 = vmatpush3.bf16.msra.mxu0 %v2816_v8  ;;  %2649 = vmatpush3.bf16.msra.mxu1 %v2817_v9 }
  0x2f   : > { %2628 = vmatprep.subr.bf16.mxu0 %v2818_v10  ;;  %2650 = vmatprep.subr.bf16.mxu1 %v2819_v11 }
  0x32   : > { %2629 = vmatpush3.bf16.msra.mxu0 %v2820_v12  ;;  %2651 = vmatpush3.bf16.msra.mxu1 %v2821_v13  ;;  %v348_v12 = vrot.slane %v317_v39, %v347_v57 }
  0x33   : > { %2630 = vmatprep.subr.bf16.mxu0 %v2822_v14  ;;  %2652 = vmatprep.subr.bf16.mxu1 %v2823_v15  ;;  %v352_v15 = vrot.slane %v317_v39, %v351_v63  ;;  %v2848_v39 = vld [vmem:[%s3631_s3 + $0x108] sm:$0xff]  }
  0x36   : > { %2631 = vmatpush3.bf16.msra.mxu0 %v2824_v16  ;;  %2653 = vmatpush3.bf16.msra.mxu1 %v2825_v17 }
  0x37   : > { %2632 = vmatprep.subr.bf16.mxu0 %v2826_v18  ;;  %2654 = vmatprep.subr.bf16.mxu1 %v2827_v19  ;;  %v2844_v18 = vld [vmem:[%s3631_s3 + $0x100] sm:$0xff]  }
  0x3a   : > { %2633 = vmatpush3.bf16.msra.mxu0 %v2828_v20  ;;  %2655 = vmatpush3.bf16.msra.mxu1 %v2829_v21  ;;  %v2845_v21 = vld [vmem:[%s3631_s3 + $0x180] sm:$0xff]  }
  0x3b   : > { %2634 = vmatprep.subr.bf16.mxu0 %v2830_v22  ;;  %2656 = vmatprep.subr.bf16.mxu1 %v2831_v23  ;;  %v2846_v22 = vld [vmem:[%s3631_s3 + $0x148] sm:$0xff]  }
  0x3e   : > { %2635 = vmatpush3.bf16.msra.mxu0 %v2832_v24  ;;  %2657 = vmatpush3.bf16.msra.mxu1 %v2833_v25 }
  0x3f   : > { %2636 = vmatprep.subr.bf16.mxu0 %v2834_v26  ;;  %2658 = vmatprep.subr.bf16.mxu1 %v2835_v27  ;;  %v2847_v26 = vld [vmem:[%s3631_s3 + $0x1c8] sm:$0xff]  }
  0x42   : > { %2637 = vmatpush3.bf16.msra.mxu0 %v2836_v28  ;;  %2659 = vmatpush3.bf16.msra.mxu1 %v2837_v29 }
  0x43   : > { %2638 = vmatprep.subr.bf16.mxu0 %v2838_v30  ;;  %2660 = vmatprep.subr.bf16.mxu1 %v2839_v31  ;;  %v3280_v31 = vld [vmem:[%s3630_s2 + $0x8] sm:$0xff] }
  0x46   : > { %2639 = vmatpush3.bf16.msra.mxu0 %v2840_v32  ;;  %2661 = vmatpush3.bf16.msra.mxu1 %v2841_v33 }
  0x47   : > { %2668 = vmatprep.subr.bf16.mxu0 %v2842_v34  ;;  %2690 = vmatprep.subr.bf16.mxu1 %v2843_v35 }
  0xe4   : > { %v604_v48 = vpop.f32.mrb[0].mxu0  ;;  %v647_v51 = vpop.f32.mrb[0].mxu1 }
  0xe5   : > { %v605_v50 = vadd.f32 %v604_v48, %v324_v43  ;;  %v606_v52 = vpop.f32.mrb[1].mxu0  ;;  %v648_v53 = vadd.f32 %v647_v51, %v332_v44  ;;  %v649_v55 = vpop.f32.mrb[1].mxu1  ;;  %v2850_v51 = vld [vmem:[%s3631_s3 + $0x150] sm:$0xff]  }
  0xe6   : > { %v607_v54 = vadd.f32 %v606_v52, %v328_v45  ;;  %v608_v56 = vpop.f32.mrb[2].mxu0  ;;  %v650_v58 = vadd.f32 %v649_v55, %v336_v46  ;;  %v651_v60 = vpop.f32.mrb[2].mxu1  ;;  %v356_v55 = vrot.slane %v3280_v31, %v323_v38  ;;  %v368_v38 = vrot.slane %v3280_v31, %v335_v42 }
  0xe7   : > { %v609_v59 = vadd.f32 %v608_v56, %v324_v43  ;;  %v610_v61 = vpop.f32.mrb[3].mxu0  ;;  %v916_v0 = vmax.f32 %v648_v53, 0.0  ;;  %v652_v1 = vadd.f32 %v651_v60, %v332_v44  ;;  %v653_v3 = vpop.f32.mrb[3].mxu1  ;;  %v914_v5 = vmax.f32 %v605_v50, 0.0  ;;  %v2849_v50 = vld [vmem:[%s3631_s3 + $0x188] sm:$0xff]   ;;  %v2851_v56 = vld [vmem:[%s3631_s3 + $0x1d0] sm:$0xff]  }
  0xe8   : > { %v611_v2 = vadd.f32 %v610_v61, %v328_v45  ;;  %v917_v6 = vmax.f32 %v650_v58, 0.0  ;;  %v654_v8 = vadd.f32 %v653_v3, %v336_v46  ;;  %v915_v9 = vmax.f32 %v607_v54, 0.0 }
  0xe9   : > { %v930_v7 = vmax.f32 %v609_v59, 0.0  ;;  %v932_v10 = vmax.f32 %v652_v1, 0.0  ;;  %v360_v60 = vrot.slane %v3280_v31, %v327_v41  ;;  %v364_v61 = vrot.slane %v3280_v31, %v331_v40  ;;  %v2852_v1 = vld [vmem:[%s3631_s3 + $0x110] sm:$0xff]  }
  0xea   : > { %v931_v11 = vmax.f32 %v611_v2, 0.0  ;;  %v933_v14 = vmax.f32 %v654_v8, 0.0  ;;  %v2853_v40 = vld [vmem:[%s3631_s3 + $0x190] sm:$0xff]   ;;  %v2855_v8 = vld [vmem:[%s3631_s3 + $0x1d8] sm:$0xff]  }
  0xeb   : > { %v1202_v13 = vpack.c.bf16 %v930_v7, %v914_v5  ;;  %v1204_v16 = vpack.c.bf16 %v932_v10, %v916_v0 }
  0xec   : > { %v1203_v17 = vpack.c.bf16 %v931_v11, %v915_v9  ;;  %v690_v19 = vpop.f32.mrb[4].mxu0  ;;  %v1205_v20 = vpack.c.bf16 %v933_v14, %v917_v6  ;;  %v733_v25 = vpop.f32.mrb[4].mxu1 }
  0xed   : > { %v691_v23 = vadd.f32 %v690_v19, %v340_v62  ;;  %v692_v24 = vpop.f32.mrb[5].mxu0  ;;  %v734_v29 = vadd.f32 %v733_v25, %v348_v12  ;;  %v735_v30 = vpop.f32.mrb[5].mxu1  ;;  %v2858_v25 = vld [vmem:[%s3631_s3 + $0x160] sm:$0xff]  }
  0xee   : > { %2025 = vmatprep.mubr.bf16.mxu0 %v1203_v17  ;;  %v693_v27 = vadd.f32 %v692_v24, %v344_v4  ;;  %v694_v28 = vpop.f32.mrb[6].mxu0  ;;  %2066 = vmatprep.mubr.bf16.mxu1 %v1205_v20  ;;  %v736_v35 = vadd.f32 %v735_v30, %v352_v15  ;;  %v737_v36 = vpop.f32.mrb[6].mxu1  ;;  %v2857_v24 = vld [vmem:[%s3631_s3 + $0x198] sm:$0xff]   ;;  %v2859_v30 = vld [vmem:[%s3631_s3 + $0x1e0] sm:$0xff]  }
  0xef   : > { %2026 = vmatmul.mubr.bf16.vlgmr.msra.gmra.mrb[16].mxu0 %v1202_v13  ;;  %v918_v32 = vmax.f32 %v691_v23, 0.0  ;;  %v695_v33 = vadd.f32 %v694_v28, %v340_v62  ;;  %v696_v34 = vpop.f32.mrb[7].mxu0  ;;  %2067 = vmatmul.mubr.bf16.vlgmr.msra.gmra.mrb[16].mxu1 %v1204_v16  ;;  %v920_v44 = vmax.f32 %v734_v29, 0.0  ;;  %v738_v46 = vadd.f32 %v737_v36, %v348_v12  ;;  %v739_v48 = vpop.f32.mrb[7].mxu1 }
  0xf0   : > { %2669 = vmatpush3.bf16.msra.mxu0 %v2844_v18  ;;  %v919_v43 = vmax.f32 %v693_v27, 0.0  ;;  %v697_v45 = vadd.f32 %v696_v34, %v344_v4  ;;  %2691 = vmatpush3.bf16.msra.mxu1 %v2845_v21  ;;  %v921_v53 = vmax.f32 %v736_v35, 0.0  ;;  %v740_v54 = vadd.f32 %v739_v48, %v352_v15  ;;  %v2854_v4 = vld [vmem:[%s3631_s3 + $0x158] sm:$0xff]  }
  0xf1   : > { %2670 = vmatprep.subr.bf16.mxu0 %v2846_v22  ;;  %v934_v52 = vmax.f32 %v695_v33, 0.0  ;;  %2692 = vmatprep.subr.bf16.mxu1 %v2847_v26  ;;  %v936_v59 = vmax.f32 %v738_v46, 0.0  ;;  %v2856_v18 = vld [vmem:[%s3631_s3 + $0x118] sm:$0xff]   ;;  %v372_v29 = vrot.slane %v3280_v31, %v339_v47  ;;  %v376_v34 = vrot.slane %v3280_v31, %v343_v49 }
  0xf2   : > { %v935_v58 = vmax.f32 %v697_v45, 0.0  ;;  %v937_v0 = vmax.f32 %v740_v54, 0.0  ;;  %v380_v35 = vrot.slane %v3280_v31, %v347_v57  ;;  %v384_v47 = vrot.slane %v3280_v31, %v351_v63  ;;  %v2861_v57 = vld [vmem:[%s3631_s3 + $0x1a0] sm:$0xff]  }
  0xf3   : > { %v3303_v62 = vpack.c.bf16 %v934_v52, %v918_v32  ;;  %v3311_v3 = vpack.c.bf16 %v936_v59, %v920_v44 }
  0xf4   : > { %2671 = vmatpush3.bf16.msra.mxu0 %v2848_v39  ;;  %v1207_v2 = vpack.c.bf16 %v935_v58, %v919_v43  ;;  %v776_v41 = vpop.f32.mrb[8].mxu0  ;;  %2693 = vmatpush3.bf16.msra.mxu1 %v2849_v50  ;;  %v1209_v42 = vpack.c.bf16 %v937_v0, %v921_v53  ;;  %v819_v7 = vpop.f32.mrb[8].mxu1  ;;  %v2860_v43 = vld [vmem:[%s3631_s3 + $0x120] sm:$0xff]   ;;  %v2863_v50 = vld [vmem:[%s3631_s3 + $0x1e8] sm:$0xff]  }
  0xf5   : > { %2672 = vmatprep.subr.bf16.mxu0 %v2850_v51  ;;  %v777_v5 = vadd.f32 %v776_v41, %v356_v55  ;;  %v778_v6 = vpop.f32.mrb[9].mxu0  ;;  %2694 = vmatprep.subr.bf16.mxu1 %v2851_v56  ;;  %v820_v11 = vadd.f32 %v819_v7, %v364_v61  ;;  %v821_v12 = vpop.f32.mrb[9].mxu1  ;;  %v2867_v7 = vld [vmem:[%s3631_s3 + $0x1f0] sm:$0xff]  }
  0xf6   : > { %2107 = vmatprep.mubr.bf16.mxu0 %v1207_v2  ;;  %v779_v9 = vadd.f32 %v778_v6, %v360_v60  ;;  %v780_v10 = vpop.f32.mrb[10].mxu0  ;;  %2148 = vmatprep.mubr.bf16.mxu1 %v1209_v42  ;;  %v822_v16 = vadd.f32 %v821_v12, %v368_v38  ;;  %v823_v17 = vpop.f32.mrb[10].mxu1  ;;  %v2868_v12 = vld [vmem:[%s3631_s3 + $0x130] sm:$0xff]  }
  0xf7   : > { %v922_v13 = vmax.f32 %v777_v5, 0.0  ;;  %v781_v14 = vadd.f32 %v780_v10, %v356_v55  ;;  %v782_v15 = vpop.f32.mrb[11].mxu0  ;;  %v924_v20 = vmax.f32 %v820_v11, 0.0  ;;  %v824_v22 = vadd.f32 %v823_v17, %v364_v61  ;;  %v825_v23 = vpop.f32.mrb[11].mxu1  ;;  %v2864_v61 = vld [vmem:[%s3631_s3 + $0x128] sm:$0xff]  }
  0xf8   : > { %2673 = vmatpush3.bf16.msra.mxu0 %v2852_v1  ;;  %v923_v19 = vmax.f32 %v779_v9, 0.0  ;;  %v783_v21 = vadd.f32 %v782_v15, %v360_v60  ;;  %2695 = vmatpush3.bf16.msra.mxu1 %v2853_v40  ;;  %v925_v27 = vmax.f32 %v822_v16, 0.0  ;;  %v826_v28 = vadd.f32 %v825_v23, %v368_v38  ;;  %v2865_v40 = vld [vmem:[%s3631_s3 + $0x1a8] sm:$0xff]   ;;  %v2869_v15 = vld [vmem:[%s3631_s3 + $0x1b0] sm:$0xff]   ;;  %v2870_v16 = vld [vmem:[%s3631_s3 + $0x178] sm:$0xff]  }
  0xf9   : > { %2674 = vmatprep.subr.bf16.mxu0 %v2854_v4  ;;  %v938_v26 = vmax.f32 %v781_v14, 0.0  ;;  %2696 = vmatprep.subr.bf16.mxu1 %v2855_v8  ;;  %v940_v33 = vmax.f32 %v824_v22, 0.0  ;;  %v2866_v4 = vld [vmem:[%s3631_s3 + $0x170] sm:$0xff]   ;;  %v2875_v22 = vld [vmem:[%s3631_s3 + $0x2c0] sm:$0xff]  }
  0xfa   : > { %v939_v32 = vmax.f32 %v783_v21, 0.0  ;;  %v941_v39 = vmax.f32 %v826_v28, 0.0  ;;  %v2874_v21 = vld [vmem:[%s3631_s3 + $0x240] sm:$0xff]   ;;  %v2881_v28 = vld [vmem:[%s3631_s3 + $0x288] sm:$0xff]  }
  0xfb   : > { %v3343_v36 = vpack.c.bf16 %v938_v26, %v922_v13  ;;  %v3353_v45 = vpack.c.bf16 %v940_v33, %v924_v20  ;;  %v2873_v20 = vld [vmem:[%s3631_s3 + $0x1b8] sm:$0xff]   ;;  %v2876_v23 = vld [vmem:[%s3631_s3 + $0x200] sm:$0xff]   ;;  %v2879_v26 = vld [vmem:[%s3631_s3 + $0x2c8] sm:$0xff]  }
  0xfc   : > { %2675 = vmatpush3.bf16.msra.mxu0 %v2856_v18  ;;  %v3351_v44 = vpack.c.bf16 %v939_v32, %v923_v19  ;;  %v862_v49 = vpop.f32.mrb[12].mxu0  ;;  %2697 = vmatpush3.bf16.msra.mxu1 %v2857_v24  ;;  %v3361_v63 = vpack.c.bf16 %v941_v39, %v925_v27  ;;  %v905_v48 = vpop.f32.mrb[12].mxu1  ;;  %v2871_v18 = vld [vmem:[%s3631_s3 + $0x1f8] sm:$0xff]   ;;  %v2877_v24 = vld [vmem:[%s3631_s3 + $0x280] sm:$0xff]   ;;  %v2880_v27 = vld [vmem:[%s3631_s3 + $0x208] sm:$0xff]  }
  0xfd   : > { %2676 = vmatprep.subr.bf16.mxu0 %v2858_v25  ;;  %v863_v31 = vadd.f32 %v862_v49, %v372_v29  ;;  %v864_v46 = vpop.f32.mrb[13].mxu0  ;;  %2698 = vmatprep.subr.bf16.mxu1 %v2859_v30  ;;  %v906_v53 = vadd.f32 %v905_v48, %v380_v35  ;;  %v907_v54 = vpop.f32.mrb[13].mxu1  ;;  %v2872_v19 = vld [vmem:[%s3631_s3 + $0x138] sm:$0xff]   ;;  %v2878_v25 = vld [vmem:[%s3631_s3 + $0x248] sm:$0xff]   ;;  %v2885_v30 = vld [vmem:[%s3631_s3 + $0x290] sm:$0xff]  }
  0xfe   : > { %v865_v51 = vadd.f32 %v864_v46, %v376_v34  ;;  %v866_v52 = vpop.f32.mrb[14].mxu0  ;;  %v908_v59 = vadd.f32 %v907_v54, %v384_v47  ;;  %v909_v60 = vpop.f32.mrb[14].mxu1  ;;  %v2886_v32 = vld [vmem:[%s3631_s3 + $0x258] sm:$0xff]   ;;  %v2890_v39 = vld [vmem:[%s3631_s3 + $0x260] sm:$0xff]   ;;  %v2894_v49 = vld [vmem:[%s3631_s3 + $0x268] sm:$0xff]  }
  0xff   : > { %v926_v55 = vmax.f32 %v863_v31, 0.0  ;;  %v867_v56 = vadd.f32 %v866_v52, %v372_v29  ;;  %v868_v58 = vpop.f32.mrb[15].mxu0  ;;  %v928_v38 = vmax.f32 %v906_v53, 0.0  ;;  %v910_v2 = vadd.f32 %v909_v60, %v380_v35  ;;  %v911_v41 = vpop.f32.mrb[15].mxu1  ;;  %v2882_v29 = vld [vmem:[%s3631_s3 + $0x250] sm:$0xff]   ;;  %v2887_v33 = vld [vmem:[%s3631_s3 + $0x2d8] sm:$0xff]  }
 0x100   : > { %2677 = vmatpush3.bf16.msra.mxu0 %v2860_v43  ;;  %v927_v0 = vmax.f32 %v865_v51, 0.0  ;;  %v869_v1 = vadd.f32 %v868_v58, %v376_v34  ;;  %2699 = vmatpush3.bf16.msra.mxu1 %v2861_v57  ;;  %v929_v5 = vmax.f32 %v908_v59, 0.0  ;;  %v912_v6 = vadd.f32 %v911_v41, %v384_v47  ;;  %v2888_v34 = vld [vmem:[%s3631_s3 + $0x218] sm:$0xff]   ;;  %v2891_v47 = vld [vmem:[%s3631_s3 + $0x2e0] sm:$0xff]   ;;  %v2895_v57 = vld [vmem:[%s3631_s3 + $0x2e8] sm:$0xff]  }
 0x101   : > { %2678 = vmatprep.subr.bf16.mxu0 %v2862_v37  ;;  %v942_v42 = vmax.f32 %v867_v56, 0.0  ;;  %2700 = vmatprep.subr.bf16.mxu1 %v2863_v50  ;;  %v944_v9 = vmax.f32 %v910_v2, 0.0  ;;  %v2889_v35 = vld [vmem:[%s3631_s3 + $0x298] sm:$0xff]   ;;  %v2892_v43 = vld [vmem:[%s3631_s3 + $0x220] sm:$0xff]   ;;  %v2896_v37 = vld [vmem:[%s3631_s3 + $0x228] sm:$0xff]  }
 0x102   : > { %v943_v8 = vmax.f32 %v869_v1, 0.0  ;;  %v945_v11 = vmax.f32 %v912_v6, 0.0  ;;  %v2898_v31 = vld [vmem:[%s3631_s3 + $0x270] sm:$0xff]   ;;  %v2902_v51 = vld [vmem:[%s3631_s3 + $0x278] sm:$0xff]   ;;  %v2907_v56 = vld [vmem:[%s3631_s3 + $0x3c0] sm:$0xff]  }
 0x103   : > { %v3378_v10 = vpack.c.bf16 %v942_v42, %v926_v55  ;;  %v3385_v14 = vpack.c.bf16 %v944_v9, %v928_v38  ;;  %v2899_v46 = vld [vmem:[%s3631_s3 + $0x2f0] sm:$0xff]   ;;  %v2903_v52 = vld [vmem:[%s3631_s3 + $0x2f8] sm:$0xff]   ;;  %v2906_v55 = vld [vmem:[%s3631_s3 + $0x340] sm:$0xff]  }
 0x104   : > { %2679 = vmatpush3.bf16.msra.mxu0 %v2864_v61  ;;  %v3383_v13 = vpack.c.bf16 %v943_v8, %v927_v0  ;;  %2701 = vmatpush3.bf16.msra.mxu1 %v2865_v40  ;;  %v3393_v17 = vpack.c.bf16 %v945_v11, %v929_v5  ;;  %v2900_v48 = vld [vmem:[%s3631_s3 + $0x230] sm:$0xff]   ;;  %v2904_v53 = vld [vmem:[%s3631_s3 + $0x238] sm:$0xff]   ;;  %v2908_v58 = vld [vmem:[%s3631_s3 + $0x300] sm:$0xff]  }
 0x105   : > { %2680 = vmatprep.subr.bf16.mxu0 %v2866_v4  ;;  %2702 = vmatprep.subr.bf16.mxu1 %v2867_v7  ;;  %v2901_v50 = vld [vmem:[%s3631_s3 + $0x2b0] sm:$0xff]   ;;  %v2905_v54 = vld [vmem:[%s3631_s3 + $0x2b8] sm:$0xff]   ;;  %v2909_v59 = vld [vmem:[%s3631_s3 + $0x380] sm:$0xff]  }
 0x106   : > { %v2910_v60 = vld [vmem:[%s3631_s3 + $0x348] sm:$0xff]   ;;  %v2914_v1 = vld [vmem:[%s3631_s3 + $0x350] sm:$0xff]   ;;  %v2918_v41 = vld [vmem:[%s3631_s3 + $0x358] sm:$0xff]  }
 0x107   : > { %v2911_v61 = vld [vmem:[%s3631_s3 + $0x3c8] sm:$0xff]   ;;  %v2917_v2 = vld [vmem:[%s3631_s3 + $0x390] sm:$0xff]   ;;  %v2919_v40 = vld [vmem:[%s3631_s3 + $0x3d8] sm:$0xff]  }
 0x108   : > { %2681 = vmatpush3.bf16.msra.mxu0 %v2868_v12  ;;  %2703 = vmatpush3.bf16.msra.mxu1 %v2869_v15  ;;  %v2912_v0 = vld [vmem:[%s3631_s3 + $0x308] sm:$0xff]   ;;  %v2920_v4 = vld [vmem:[%s3631_s3 + $0x318] sm:$0xff]   ;;  %v2922_v5 = vld [vmem:[%s3631_s3 + $0x360] sm:$0xff]  }
 0x109   : > { %2682 = vmatprep.subr.bf16.mxu0 %v2870_v16  ;;  %2704 = vmatprep.subr.bf16.mxu1 %v2871_v18  ;;  %v2913_v38 = vld [vmem:[%s3631_s3 + $0x388] sm:$0xff]   ;;  %v2921_v42 = vld [vmem:[%s3631_s3 + $0x398] sm:$0xff]   ;;  %v2923_v6 = vld [vmem:[%s3631_s3 + $0x3e0] sm:$0xff]  }
 0x10a   : > { %v2924_v7 = vld [vmem:[%s3631_s3 + $0x320] sm:$0xff]   ;;  %v2926_v9 = vld [vmem:[%s3631_s3 + $0x368] sm:$0xff]   ;;  %v2930_v15 = vld [vmem:[%s3631_s3 + $0x370] sm:$0xff]  }
 0x10b   : > { %v2925_v8 = vld [vmem:[%s3631_s3 + $0x3a0] sm:$0xff]   ;;  %v2927_v11 = vld [vmem:[%s3631_s3 + $0x3e8] sm:$0xff]   ;;  %v2931_v16 = vld [vmem:[%s3631_s3 + $0x3f0] sm:$0xff]  }
 0x10c   : > { %2683 = vmatpush3.bf16.msra.mxu0 %v2872_v19  ;;  %2705 = vmatpush3.bf16.msra.mxu1 %v2873_v20  ;;  %v2928_v12 = vld [vmem:[%s3631_s3 + $0x328] sm:$0xff]   ;;  %v2933_v18 = vld [vmem:[%s3631_s3 + $0x3b0] sm:$0xff]   ;;  %v2934_v19 = vld [vmem:[%s3631_s3 + $0x378] sm:$0xff]  }
 0x10d   : > { %2712 = vmatprep.subr.bf16.mxu0 %v2874_v21  ;;  %2734 = vmatprep.subr.bf16.mxu1 %v2875_v22  ;;  %v2935_v20 = vld [vmem:[%s3631_s3 + $0x3f8] sm:$0xff]  }
 0x10e   : > { %v2936_v21 = vld [vmem:[%s3631_s3 + $0x338] sm:$0xff]  }
 0x10f   : > { %2108 = vmatmul.mubr.bf16.vlgmr.msra.gmra.mrb[20].mxu0 %v3303_v62  ;;  %2149 = vmatmul.mubr.bf16.vlgmr.msra.gmra.mrb[20].mxu1 %v3311_v3  ;;  %v2883_v62 = vld [vmem:[%s3631_s3 + $0x2d0] sm:$0xff]   ;;  %v2937_v22 = vld [vmem:[%s3631_s3 + $0x3b8] sm:$0xff]  }
 0x110   : > { %2713 = vmatpush3.bf16.msra.mxu0 %v2876_v23  ;;  %2735 = vmatpush3.bf16.msra.mxu1 %v2877_v24  ;;  %v2884_v3 = vld [vmem:[%s3631_s3 + $0x210] sm:$0xff]  }
 0x111   : > { %2714 = vmatprep.subr.bf16.mxu0 %v2878_v25  ;;  %2736 = vmatprep.subr.bf16.mxu1 %v2879_v26  ;;  %v2487_v25 = vld [vmem:[%s3632_s4] ss:$0 sm:$0xff] }
 0x112   : > { %2189 = vmatprep.mubr.bf16.mxu0 %v3351_v44  ;;  %2230 = vmatprep.mubr.bf16.mxu1 %v3361_v63  ;;  %v2893_v44 = vld [vmem:[%s3631_s3 + $0x2a0] sm:$0xff]   ;;  %v2897_v63 = vld [vmem:[%s3631_s3 + $0x2a8] sm:$0xff]  }
 0x114   : > { %2715 = vmatpush3.bf16.msra.mxu0 %v2880_v27  ;;  %2737 = vmatpush3.bf16.msra.mxu1 %v2881_v28 }
 0x115   : > { %2716 = vmatprep.subr.bf16.mxu0 %v2882_v29  ;;  %2738 = vmatprep.subr.bf16.mxu1 %v2883_v62 }
 0x118   : > { %2717 = vmatpush3.bf16.msra.mxu0 %v2884_v3  ;;  %2739 = vmatpush3.bf16.msra.mxu1 %v2885_v30 }
 0x119   : > { %2718 = vmatprep.subr.bf16.mxu0 %v2886_v32  ;;  %2740 = vmatprep.subr.bf16.mxu1 %v2887_v33 }
 0x11c   : > { %2719 = vmatpush3.bf16.msra.mxu0 %v2888_v34  ;;  %2741 = vmatpush3.bf16.msra.mxu1 %v2889_v35 }
 0x11d   : > { %2720 = vmatprep.subr.bf16.mxu0 %v2890_v39  ;;  %2742 = vmatprep.subr.bf16.mxu1 %v2891_v47 }
 0x120   : > { %2721 = vmatpush3.bf16.msra.mxu0 %v2892_v43  ;;  %2743 = vmatpush3.bf16.msra.mxu1 %v2893_v44 }
 0x121   : > { %2722 = vmatprep.subr.bf16.mxu0 %v2894_v49  ;;  %2744 = vmatprep.subr.bf16.mxu1 %v2895_v57 }
 0x124   : > { %2723 = vmatpush3.bf16.msra.mxu0 %v2896_v37  ;;  %2745 = vmatpush3.bf16.msra.mxu1 %v2897_v63 }
 0x125   : > { %2724 = vmatprep.subr.bf16.mxu0 %v2898_v31  ;;  %2746 = vmatprep.subr.bf16.mxu1 %v2899_v46 }
 0x128   : > { %2725 = vmatpush3.bf16.msra.mxu0 %v2900_v48  ;;  %2747 = vmatpush3.bf16.msra.mxu1 %v2901_v50 }
 0x129   : > { %2726 = vmatprep.subr.bf16.mxu0 %v2902_v51  ;;  %2748 = vmatprep.subr.bf16.mxu1 %v2903_v52 }
 0x12c   : > { %2727 = vmatpush3.bf16.msra.mxu0 %v2904_v53  ;;  %2749 = vmatpush3.bf16.msra.mxu1 %v2905_v54 }
 0x12d   : > { %2756 = vmatprep.subr.bf16.mxu0 %v2906_v55  ;;  %2778 = vmatprep.subr.bf16.mxu1 %v2907_v56 }
 0x12f   : > { %2190 = vmatmul.mubr.bf16.vlgmr.msra.gmra.mrb[24].mxu0 %v3343_v36  ;;  %2231 = vmatmul.mubr.bf16.vlgmr.msra.gmra.mrb[24].mxu1 %v3353_v45  ;;  %v2915_v36 = vld [vmem:[%s3631_s3 + $0x3d0] sm:$0xff]  }
 0x130   : > { %2757 = vmatpush3.bf16.msra.mxu0 %v2908_v58  ;;  %2779 = vmatpush3.bf16.msra.mxu1 %v2909_v59  ;;  %v2916_v45 = vld [vmem:[%s3631_s3 + $0x310] sm:$0xff]  }
 0x131   : > { %2758 = vmatprep.subr.bf16.mxu0 %v2910_v60  ;;  %2780 = vmatprep.subr.bf16.mxu1 %v2911_v61 }
 0x132   : > { %2271 = vmatprep.mubr.bf16.mxu0 %v3383_v13  ;;  %2312 = vmatprep.mubr.bf16.mxu1 %v3393_v17  ;;  %v2929_v13 = vld [vmem:[%s3631_s3 + $0x3a8] sm:$0xff]   ;;  %v2932_v17 = vld [vmem:[%s3631_s3 + $0x330] sm:$0xff]  }
 0x134   : > { %2759 = vmatpush3.bf16.msra.mxu0 %v2912_v0  ;;  %2781 = vmatpush3.bf16.msra.mxu1 %v2913_v38 }
 0x135   : > { %2760 = vmatprep.subr.bf16.mxu0 %v2914_v1  ;;  %2782 = vmatprep.subr.bf16.mxu1 %v2915_v36 }
 0x138   : > { %2761 = vmatpush3.bf16.msra.mxu0 %v2916_v45  ;;  %2783 = vmatpush3.bf16.msra.mxu1 %v2917_v2 }
 0x139   : > { %2762 = vmatprep.subr.bf16.mxu0 %v2918_v41  ;;  %2784 = vmatprep.subr.bf16.mxu1 %v2919_v40 }
 0x13c   : > { %2763 = vmatpush3.bf16.msra.mxu0 %v2920_v4  ;;  %2785 = vmatpush3.bf16.msra.mxu1 %v2921_v42 }
 0x13d   : > { %2764 = vmatprep.subr.bf16.mxu0 %v2922_v5  ;;  %2786 = vmatprep.subr.bf16.mxu1 %v2923_v6 }
 0x140   : > { %2765 = vmatpush3.bf16.msra.mxu0 %v2924_v7  ;;  %2787 = vmatpush3.bf16.msra.mxu1 %v2925_v8 }
 0x141   : > { %2766 = vmatprep.subr.bf16.mxu0 %v2926_v9  ;;  %2788 = vmatprep.subr.bf16.mxu1 %v2927_v11 }
 0x144   : > { %2767 = vmatpush3.bf16.msra.mxu0 %v2928_v12  ;;  %2789 = vmatpush3.bf16.msra.mxu1 %v2929_v13 }
 0x145   : > { %2768 = vmatprep.subr.bf16.mxu0 %v2930_v15  ;;  %2790 = vmatprep.subr.bf16.mxu1 %v2931_v16 }
 0x148   : > { %2769 = vmatpush3.bf16.msra.mxu0 %v2932_v17  ;;  %2791 = vmatpush3.bf16.msra.mxu1 %v2933_v18 }
 0x149   : > { %2770 = vmatprep.subr.bf16.mxu0 %v2934_v19  ;;  %2792 = vmatprep.subr.bf16.mxu1 %v2935_v20  ;;  %v2943_v20 = vld [vmem:[%s3047_s10] sm:$0xff]  }
 0x14c   : > { %2771 = vmatpush3.bf16.msra.mxu0 %v2936_v21  ;;  %2793 = vmatpush3.bf16.msra.mxu1 %v2937_v22  ;;  %v2321_v21 = vunpack.c.l.bf16 %v2943_v20 }
 0x14f   : > { %2272 = vmatmul.mubr.bf16.vlgmr.msra.gmra.mrb[28].mxu0 %v3378_v10  ;;  %2313 = vmatmul.mubr.bf16.vlgmr.msra.gmra.mrb[28].mxu1 %v3385_v14 }
 0x1c2   : > { %v2640_v23 = vpop.f32.mrb[16].mxu0  ;;  %v2662_v24 = vpop.f32.mrb[16].mxu1 }
 0x1c3   : > { %v2641_v26 = vpop.f32.mrb[17].mxu0  ;;  %v2663_v28 = vpop.f32.mrb[17].mxu1 }
 0x1c4   : > { %v2642_v27 = vadd.f32 %v2641_v26, %v2640_v23  ;;  %v2643_v29 = vpop.f32.mrb[18].mxu0  ;;  %v2664_v62 = vadd.f32 %v2663_v28, %v2662_v24  ;;  %v2665_v3 = vpop.f32.mrb[18].mxu1 }
 0x1c5   : > { %v2644_v30 = vpop.f32.mrb[19].mxu0  ;;  %v2666_v34 = vpop.f32.mrb[19].mxu1 }
 0x1c6   : > { %v2028_v32 = vadd.f32 %v2642_v27, %v2487_v25  ;;  %v2645_v33 = vadd.f32 %v2644_v30, %v2643_v29  ;;  %v2667_v35 = vadd.f32 %v2666_v34, %v2665_v3 }
 0x1c8   : > { %v2069_v10 = vadd.f32 %v2664_v62, %v2028_v32  ;;  %v2031_v39 = vadd.f32 %v2645_v33, %v2487_v25  ;;  %v2322_v25 = vunpack.c.h.bf16 %v2943_v20 }
 0x1ca   : > { %v2072_v14 = vadd.f32 %v2667_v35, %v2031_v39 }
 0x1e2   : > { %v2684_v47 = vpop.f32.mrb[20].mxu0  ;;  %v2706_v43 = vpop.f32.mrb[20].mxu1 }
 0x1e3   : > { %v2685_v44 = vpop.f32.mrb[21].mxu0  ;;  %v2707_v57 = vpop.f32.mrb[21].mxu1 }
 0x1e4   : > { %v2686_v49 = vadd.f32 %v2685_v44, %v2684_v47  ;;  %v2687_v37 = vpop.f32.mrb[22].mxu0  ;;  %v2708_v63 = vadd.f32 %v2707_v57, %v2706_v43  ;;  %v2709_v31 = vpop.f32.mrb[22].mxu1 }
 0x1e5   : > { %v2688_v46 = vpop.f32.mrb[23].mxu0  ;;  %v2710_v51 = vpop.f32.mrb[23].mxu1 }
 0x1e6   : > { %v2110_v48 = vadd.f32 %v2686_v49, %v2069_v10  ;;  %v2689_v50 = vadd.f32 %v2688_v46, %v2687_v37  ;;  %v2711_v52 = vadd.f32 %v2710_v51, %v2709_v31  ;;  %v2616_v46 = vld [vmem:[%s3633_s5] ss:$0 sm:$0xff] }
 0x1e8   : > { %v2151_v53 = vadd.f32 %v2708_v63, %v2110_v48  ;;  %v2113_v54 = vadd.f32 %v2689_v50, %v2072_v14  ;;  %v2617_v50 = vld [vmem:[%s3634_s6] ss:$0 sm:$0xff] }
 0x1ea   : > { %v2154_v55 = vadd.f32 %v2711_v52, %v2113_v54 }
 0x202   : > { %v2728_v56 = vpop.f32.mrb[24].mxu0  ;;  %v2750_v58 = vpop.f32.mrb[24].mxu1 }
 0x203   : > { %v2729_v59 = vpop.f32.mrb[25].mxu0  ;;  %v2751_v61 = vpop.f32.mrb[25].mxu1 }
 0x204   : > { %v2730_v60 = vadd.f32 %v2729_v59, %v2728_v56  ;;  %v2731_v0 = vpop.f32.mrb[26].mxu0  ;;  %v2752_v38 = vadd.f32 %v2751_v61, %v2750_v58  ;;  %v2753_v1 = vpop.f32.mrb[26].mxu1 }
 0x205   : > { %v2732_v36 = vpop.f32.mrb[27].mxu0  ;;  %v2754_v41 = vpop.f32.mrb[27].mxu1 }
 0x206   : > { %v2192_v45 = vadd.f32 %v2730_v60, %v2151_v53  ;;  %v2733_v2 = vadd.f32 %v2732_v36, %v2731_v0  ;;  %v2755_v40 = vadd.f32 %v2754_v41, %v2753_v1 }
 0x208   : > { %v2233_v4 = vadd.f32 %v2752_v38, %v2192_v45  ;;  %v2195_v42 = vadd.f32 %v2733_v2, %v2154_v55 }
 0x20a   : > { %v2236_v5 = vadd.f32 %v2755_v40, %v2195_v42 }
 0x222   : > { %v2772_v6 = vpop.f32.mrb[28].mxu0  ;;  %v2794_v7 = vpop.f32.mrb[28].mxu1 }
 0x223   : > { %v2773_v8 = vpop.f32.mrb[29].mxu0  ;;  %v2795_v11 = vpop.f32.mrb[29].mxu1 }
 0x224   : > { %v2774_v9 = vadd.f32 %v2773_v8, %v2772_v6  ;;  %v2775_v12 = vpop.f32.mrb[30].mxu0  ;;  %v2796_v13 = vadd.f32 %v2795_v11, %v2794_v7  ;;  %v2797_v15 = vpop.f32.mrb[30].mxu1 }
 0x225   : > { %v2776_v16 = vpop.f32.mrb[31].mxu0  ;;  %v2798_v19 = vpop.f32.mrb[31].mxu1 }
 0x226   : > { %v2274_v17 = vadd.f32 %v2774_v9, %v2233_v4  ;;  %v2777_v18 = vadd.f32 %v2776_v16, %v2775_v12  ;;  %v2799_v22 = vadd.f32 %v2798_v19, %v2797_v15 }
 0x228   : > { %v2315_v23 = vadd.f32 %v2796_v13, %v2274_v17  ;;  %v2277_v24 = vadd.f32 %v2777_v18, %v2236_v5 }
 0x22a   : > { %v2318_v26 = vadd.f32 %v2799_v22, %v2277_v24  ;;  %v2323_v27 = vadd.f32 %v2321_v21, %v2315_v23 }
 0x22c   : > { %v2327_v28 = vsel %vm566_vm0, %v2323_v27, 0.0  ;;  %v2324_v29 = vadd.f32 %v2322_v25, %v2318_v26 }
 0x22d   : > { %2328 = vadd.xlane.f32.xlu0 %v2327_v28 }
 0x22e   : > { %v2330_v62 = vsel %vm566_vm0, %v2324_v29, 0.0 }
 0x231   : > { %2331 = vadd.xlane.f32.xlu0 %v2330_v62 }
 0x2ba   : > { %v2329_v3 = vpop.xlane.xlu0 %2328 }
 0x2bb   : > { %v2334_v30 = vmul.f32 0.03125, %v2329_v3 }
 0x2bd   : > { %v2336_v32 = vsub.f32 %v2323_v27, %v2334_v30 }
 0x2be   : > { %v2332_v33 = vpop.xlane.xlu0 %2331 }
 0x2bf   : > { %v2335_v34 = vmul.f32 0.03125, %v2332_v33  ;;  %v2338_v35 = vmul.f32 %v2336_v32, %v2336_v32 }
 0x2c1   : > { %v2337_v10 = vsub.f32 %v2324_v29, %v2335_v34  ;;  %v2340_v39 = vsel %vm566_vm0, %v2338_v35, 0.0 }
 0x2c2   : > { %2341 = vadd.xlane.f32.xlu1 %v2340_v39 }
 0x2c3   : > { %v2339_v14 = vmul.f32 %v2337_v10, %v2337_v10 }
 0x2c5   : > { %v2343_v47 = vsel %vm566_vm0, %v2339_v14, 0.0 }
 0x2c6   : > { %2344 = vadd.xlane.f32.xlu1 %v2343_v47 }
 0x34f   : > { %v2342_v43 = vpop.xlane.xlu1 %2341 }
 0x350   : > { %v2346_v44 = vmul.f32 0.03125, %v2342_v43 }
 0x352   : > { %v2348_v49 = vadd.f32 1e-05, %v2346_v44 }
 0x353   : > { %v2345_v57 = vpop.xlane.xlu1 %2344 }
 0x354   : > { %2939 = vrsqrt.f32 %v2348_v49  ;;  %v2347_v37 = vmul.f32 0.03125, %v2345_v57 }
 0x356   : > { %v2349_v63 = vadd.f32 1e-05, %v2347_v37 }
 0x358   : > { %2941 = vrsqrt.f32 %v2349_v63 }
 0x35e   : > { %v2940_v31 = vpop.eup %2939 }
 0x35f   : > { %v2352_v48 = vmul.f32 %v2940_v31, %v2336_v32 }
 0x361   : > { %v2360_v51 = vmul.f32 %v2616_v46, %v2352_v48 }
 0x362   : > { %v2942_v52 = vpop.eup %2941 }
 0x363   : > { %v2368_v53 = vadd.f32 %v2617_v50, %v2360_v51  ;;  %v2353_v54 = vmul.f32 %v2942_v52, %v2337_v10 }
 0x365   : > { %v2622_v55 = vpack.c.bf16 %v2368_v53, %v2368_v53  ;;  %v2361_v56 = vmul.f32 %v2616_v46, %v2353_v54 }
 0x367   : > { %2379 = vst.msk [vmem:[%s280_s14] sm:$0xf] %vm2378_vm1, %v2622_v55  ;;  %v2369_v58 = vadd.f32 %v2617_v50, %v2361_v56 }
 0x369   : > { %v2623_v59 = vpack.c.bf16 %v2369_v58, %v2369_v58 }
 0x36b   : > { %2380 = vst.msk [vmem:[%s280_s14 + $0x4] sm:$0xf] %vm2378_vm1, %v2623_v59 }
 0x36c PF: > { %s17_s24 = sadd.s32 1, %s2950_s24  }
 0x36d   : > { %p14_p4 = scmp.ge.s32.totalorder %s17_s24, 4  }
 0x36f   :  { %16 = sbr.rel (!%p14_p4) target bundleno = 1 (0x1), region = 78 }

</bundles_post_ra>
